<compile_context>
chip_gen: v5e
topology: v5e:2x2
jax: 0.10.0
libtpu: 0.0.40
codegen_flags: <defaults>
</compile_context>

<pallas_src>
import functools

import jax
import jax.numpy as jnp
from jax import lax
from jax.experimental import pallas as pl
from jax.experimental.pallas import tpu as pltpu

EPS = 1e-5  # nn.BatchNorm2d default eps


# ----------------------------- config helpers ------------------------------ #

def _vmem_limit_bytes():
    """Generation-aware scoped-VMEM limit (~75% of physical, clamped)."""
    try:
        cap = int(pltpu.get_tpu_info().vmem_capacity_bytes)
    except Exception:
        cap = 64 * 1024 * 1024  # conservative fallback (v7x-sized)
    return max(32 * 1024 * 1024, min(int(cap * 0.75), 100 * 1024 * 1024))


def _compiler_params(vmem_limit):
    return pltpu.CompilerParams(dimension_semantics=("parallel",),
                                vmem_limit_bytes=vmem_limit)


def _choose_tb(n, h, w, ho, wo, ci, co, vmem_limit):
    """Largest batch block whose working set fits comfortably in VMEM while
    keeping nb = n // tb >= 2 so both v7x TensorCores get work and the
    BlockSpec pipeline can overlap DMA with compute."""
    c_big = max(ci, co)
    per_img = (2 * h * w * ci * 4                  # conv1 input (f32), dbl-buffered
               + 6 * ho * wo * co * 2              # bf16 y1/ysc/y2/res blocks
               + (ho + 2) * (wo + 2) * c_big * 4   # zero-halo scratch (f32)
               + 3 * (ho + 2) * wo * c_big * 4     # dx-shifted scratch (f32)
               + 16 * ho * wo * c_big * 4)         # temporaries / headroom
    budget = int(vmem_limit * 0.6)
    for tb in (32, 16, 8, 4, 2, 1):
        if n % tb != 0:
            continue
        if tb != 1 and tb * per_img > budget:
            continue
        if tb != 1 and n >= 2 and n // tb < 2:
            continue
        return tb
    return 1


# ----------------------------- Pallas kernels ------------------------------ #

def _store_stats(s_ref, acc, co):
    """Per-block per-channel (sum, sum_sq) partials for training-mode BN."""
    s_ref[:, 0:1, :] = jnp.sum(acc, axis=0, keepdims=True).reshape(1, 1, co)
    s_ref[:, 1:2, :] = jnp.sum(acc * acc, axis=0, keepdims=True).reshape(1, 1, co)


def _conv3x3_s1(a, w_ref, pad_ref, shbuf_ref):
    """3x3 / stride-1 / pad-1 conv of a (tb, ho, wo, ci) f32 tile against
    w_ref (9, ci, co) bf16.  Returns the f32 (m, co) accumulator.

    pad_ref  : (tb, ho+2, wo+2, ci) f32 zero-halo scratch.
    shbuf_ref: (3*tb, ho+2, wo, ci) f32, the 3 hoisted dx-shifted copies, so
               the 9 taps only slice dy along the untiled H axis.
    """
    tb, ho, wo, ci = a.shape
    m = tb * ho * wo

    # Zero the 1-wide halo every step (cheap with unpadded channels).  A
    # program_id==0-only init would be wrong under a "parallel" megacore split
    # because each core owns its own scratch copy.
    pad_ref[:, 0:1, :, :] = jnp.zeros((tb, 1, wo + 2, ci), jnp.float32)
    pad_ref[:, ho + 1:ho + 2, :, :] = jnp.zeros((tb, 1, wo + 2, ci), jnp.float32)
    pad_ref[:, :, 0:1, :] = jnp.zeros((tb, ho + 2, 1, ci), jnp.float32)
    pad_ref[:, :, wo + 1:wo + 2, :] = jnp.zeros((tb, ho + 2, 1, ci), jnp.float32)
    pad_ref[:, 1:ho + 1, 1:wo + 1, :] = a

    # Hoist the W-axis (sublane) shifts out of the tap loop: 3 shifted copies
    # instead of 9 shifted loads.
    for dx in range(3):
        shbuf_ref[dx * tb:(dx + 1) * tb] = pad_ref[:, :, dx:dx + wo, :]

    acc = None
    for t in range(9):
        dy, dx = t // 3, t % 3
        xs = shbuf_ref[dx * tb:(dx + 1) * tb, dy:dy + ho, :, :]
        xs = xs.reshape(m, ci).astype(jnp.bfloat16)
        part = jnp.dot(xs, w_ref[t], preferred_element_type=jnp.float32)
        acc = part if acc is None else acc + part
    return acc


def _conv1_s1_kernel(*refs, with_proj):
    """conv1 (3x3, stride 1, pad 1) + optional fused 1x1 projection (stride 1).

    Refs: x, w1, (wsc), y1, stats1, (ysc, stats_sc), pad_scratch, shift_scratch.
    """
    x_ref, w_ref = refs[0], refs[1]
    idx = 2
    if with_proj:
        wsc_ref = refs[idx]
        idx += 1
    y_ref, s_ref = refs[idx], refs[idx + 1]
    idx += 2
    if with_proj:
        ysc_ref, ssc_ref = refs[idx], refs[idx + 1]
        idx += 2
    pad_ref, shbuf_ref = refs[idx], refs[idx + 1]

    tb, ho, wo, ci = x_ref.shape
    co = w_ref.shape[2]
    m = tb * ho * wo

    x = x_ref[...].astype(jnp.float32)
    acc = _conv3x3_s1(x, w_ref, pad_ref, shbuf_ref)
    y_ref[...] = acc.reshape(tb, ho, wo, co).astype(y_ref.dtype)
    _store_stats(s_ref, acc, co)

    if with_proj:
        xc = x.reshape(m, ci).astype(jnp.bfloat16)
        ysc = jnp.dot(xc, wsc_ref[...], preferred_element_type=jnp.float32)
        ysc_ref[...] = ysc.reshape(tb, ho, wo, co).astype(ysc_ref.dtype)
        _store_stats(ssc_ref, ysc, co)


def _conv1_s2_kernel(*refs, with_proj):
    """conv1 (3x3, stride 2, pad 1) + fused 1x1 stride-2 projection.

    Inputs are the 4 parity (space-to-depth) planes of the spatially padded
    input, so every tap is a contiguous / at-most-offset-1 slice.
    """
    p00, p01, p10, p11 = refs[0], refs[1], refs[2], refs[3]
    w_ref = refs[4]
    idx = 5
    if with_proj:
        wsc_ref = refs[idx]
        idx += 1
    y_ref, s_ref = refs[idx], refs[idx + 1]
    idx += 2
    if with_proj:
        ysc_ref, ssc_ref = refs[idx], refs[idx + 1]

    par = {(0, 0): p00, (0, 1): p01, (1, 0): p10, (1, 1): p11}
    tb, ho, wo, co = y_ref.shape
    ci = w_ref.shape[1]
    m = tb * ho * wo

    acc = None
    for t in range(9):
        dy, dx = t // 3, t % 3
        ry, qy = dy % 2, dy // 2
        rx, qx = dx % 2, dx // 2
        xs = par[(ry, rx)][:, qy:qy + ho, qx:qx + wo, :]
        xs = xs.reshape(m, ci).astype(jnp.bfloat16)
        part = jnp.dot(xs, w_ref[t], preferred_element_type=jnp.float32)
        acc = part if acc is None else acc + part

    y_ref[...] = acc.reshape(tb, ho, wo, co).astype(y_ref.dtype)
    _store_stats(s_ref, acc, co)

    if with_proj:
        xsc = par[(1, 1)][:, 0:ho, 0:wo, :].reshape(m, ci).astype(jnp.bfloat16)
        ysc = jnp.dot(xsc, wsc_ref[...], preferred_element_type=jnp.float32)
        ysc_ref[...] = ysc.reshape(tb, ho, wo, co).astype(ysc_ref.dtype)
        _store_stats(ssc_ref, ysc, co)


def _conv2_kernel(y1_ref, sc1_ref, sf1_ref, w2_ref, y2_ref, s2_ref,
                  pad_ref, shbuf_ref):
    """Fused BN1 (folded scale/shift) + ReLU + conv2 (3x3, stride 1, pad 1)."""
    tb, ho, wo, ci = y1_ref.shape
    co = w2_ref.shape[2]

    a = jnp.maximum(y1_ref[...].astype(jnp.float32) * sc1_ref[...]
                    + sf1_ref[...], 0.0)
    acc = _conv3x3_s1(a, w2_ref, pad_ref, shbuf_ref)
    y2_ref[...] = acc.reshape(tb, ho, wo, co).astype(y2_ref.dtype)
    _store_stats(s2_ref, acc, co)


def _bn_add_relu_kernel(y2_ref, sc2_ref, sf2_ref, res_ref, scr_ref, sfr_ref,
                        o_ref):
    """out = ReLU( BN2(y2) + BN_sc(residual) ), BN folded into scale/shift."""
    main = y2_ref[...].astype(jnp.float32) * sc2_ref[...] + sf2_ref[...]
    res = res_ref[...].astype(jnp.float32) * scr_ref[...] + sfr_ref[...]
    o_ref[...] = jnp.maximum(main + res, 0.0).astype(o_ref.dtype)


# ----------------------------- pallas_call glue ----------------------------- #

def _conv1_s1_call(x, w1m, wscm, n, tb, ho, wo, ci, co, with_proj, vmem_limit):
    nb = n // tb
    kernel = functools.partial(_conv1_s1_kernel, with_proj=with_proj)
    in_specs = [pl.BlockSpec((tb, ho, wo, ci), lambda i: (i, 0, 0, 0)),
                pl.BlockSpec((9, ci, co), lambda i: (0, 0, 0))]
    args = [x, w1m]
    out_shape = [jax.ShapeDtypeStruct((n, ho, wo, co), jnp.bfloat16),
                 jax.ShapeDtypeStruct((nb, 2, co), jnp.float32)]
    out_specs = [pl.BlockSpec((tb, ho, wo, co), lambda i: (i, 0, 0, 0)),
                 pl.BlockSpec((1, 2, co), lambda i: (i, 0, 0))]
    if with_proj:
        in_specs.append(pl.BlockSpec((ci, co), lambda i: (0, 0)))
        args.append(wscm)
        out_shape += [jax.ShapeDtypeStruct((n, ho, wo, co), jnp.bfloat16),
                      jax.ShapeDtypeStruct((nb, 2, co), jnp.float32)]
        out_specs += [pl.BlockSpec((tb, ho, wo, co), lambda i: (i, 0, 0, 0)),
                      pl.BlockSpec((1, 2, co), lambda i: (i, 0, 0))]
    scratch = [pltpu.VMEM((tb, ho + 2, wo + 2, ci), jnp.float32),
               pltpu.VMEM((3 * tb, ho + 2, wo, ci), jnp.float32)]
    return pl.pallas_call(
        kernel, grid=(nb,), in_specs=in_specs, out_specs=out_specs,
        out_shape=out_shape, scratch_shapes=scratch,
        compiler_params=_compiler_params(vmem_limit),
    )(*args)


def _conv1_s2_call(planes, w1m, wscm, n, tb, ho, wo, ci, co, with_proj,
                   vmem_limit):
    nb = n // tb
    kernel = functools.partial(_conv1_s2_kernel, with_proj=with_proj)
    in_specs = [pl.BlockSpec((tb,) + tuple(p.shape[1:]),
                             lambda i: (i, 0, 0, 0)) for p in planes]
    in_specs.append(pl.BlockSpec((9, ci, co), lambda i: (0, 0, 0)))
    args = list(planes) + [w1m]
    out_shape = [jax.ShapeDtypeStruct((n, ho, wo, co), jnp.bfloat16),
                 jax.ShapeDtypeStruct((nb, 2, co), jnp.float32)]
    out_specs = [pl.BlockSpec((tb, ho, wo, co), lambda i: (i, 0, 0, 0)),
                 pl.BlockSpec((1, 2, co), lambda i: (i, 0, 0))]
    if with_proj:
        in_specs.append(pl.BlockSpec((ci, co), lambda i: (0, 0)))
        args.append(wscm)
        out_shape += [jax.ShapeDtypeStruct((n, ho, wo, co), jnp.bfloat16),
                      jax.ShapeDtypeStruct((nb, 2, co), jnp.float32)]
        out_specs += [pl.BlockSpec((tb, ho, wo, co), lambda i: (i, 0, 0, 0)),
                      pl.BlockSpec((1, 2, co), lambda i: (i, 0, 0))]
    return pl.pallas_call(
        kernel, grid=(nb,), in_specs=in_specs, out_specs=out_specs,
        out_shape=out_shape, compiler_params=_compiler_params(vmem_limit),
    )(*args)


def _conv2_call(y1, scale1, shift1, w2m, n, tb, ho, wo, co, vmem_limit):
    nb = n // tb
    return pl.pallas_call(
        _conv2_kernel,
        grid=(nb,),
        in_specs=[pl.BlockSpec((tb, ho, wo, co), lambda i: (i, 0, 0, 0)),
                  pl.BlockSpec((1, co), lambda i: (0, 0)),
                  pl.BlockSpec((1, co), lambda i: (0, 0)),
                  pl.BlockSpec((9, co, co), lambda i: (0, 0, 0))],
        out_specs=[pl.BlockSpec((tb, ho, wo, co), lambda i: (i, 0, 0, 0)),
                   pl.BlockSpec((1, 2, co), lambda i: (i, 0, 0))],
        out_shape=[jax.ShapeDtypeStruct((n, ho, wo, co), jnp.bfloat16),
                   jax.ShapeDtypeStruct((nb, 2, co), jnp.float32)],
        scratch_shapes=[pltpu.VMEM((tb, ho + 2, wo + 2, co), jnp.float32),
                        pltpu.VMEM((3 * tb, ho + 2, wo, co), jnp.float32)],
        compiler_params=_compiler_params(vmem_limit),
    )(y1, scale1, shift1, w2m)


def _bn_add_relu_call(y2, scale2, shift2, res, scale_r, shift_r,
                      n, tb, ho, wo, co, vmem_limit):
    nb = n // tb
    return pl.pallas_call(
        _bn_add_relu_kernel,
        grid=(nb,),
        in_specs=[pl.BlockSpec((tb, ho, wo, co), lambda i: (i, 0, 0, 0)),
                  pl.BlockSpec((1, co), lambda i: (0, 0)),
                  pl.BlockSpec((1, co), lambda i: (0, 0)),
                  pl.BlockSpec((tb, ho, wo, co), lambda i: (i, 0, 0, 0)),
                  pl.BlockSpec((1, co), lambda i: (0, 0)),
                  pl.BlockSpec((1, co), lambda i: (0, 0))],
        out_specs=pl.BlockSpec((tb, ho, wo, co), lambda i: (i, 0, 0, 0)),
        out_shape=jax.ShapeDtypeStruct((n, ho, wo, co), jnp.float32),
        compiler_params=_compiler_params(vmem_limit),
    )(y2, scale2, shift2, res, scale_r, shift_r)


# ------------------------------- JAX helpers -------------------------------- #

def _fold_bn(stats, count, gamma, beta):
    """Fold train-mode BN into per-channel (scale, shift): BN(y) == y*scale+shift."""
    total = jnp.sum(stats[:, 0, :], axis=0)
    total_sq = jnp.sum(stats[:, 1, :], axis=0)
    mean = total / count
    var = jnp.maximum(total_sq / count - mean * mean, 0.0)  # biased variance
    scale = gamma * lax.rsqrt(var + EPS)
    shift = beta - mean * scale
    return (scale.reshape(1, -1).astype(jnp.float32),
            shift.reshape(1, -1).astype(jnp.float32))


def _prep_w3x3(w):
    """[Cout, Cin, 3, 3] -> [9, Cin, Cout] bf16, (dy, dx) tap-major order."""
    cout, cin, _, _ = w.shape
    return jnp.transpose(w, (2, 3, 1, 0)).reshape(9, cin, cout).astype(jnp.bfloat16)


def _prep_w1x1(w):
    cout, cin, _, _ = w.shape
    return jnp.transpose(w.reshape(cout, cin), (1, 0)).astype(jnp.bfloat16)


def init_resblock_params(key, ch_in, ch_out):
    # Conv biases are omitted: a per-channel constant added before
    # training-mode BatchNorm is exactly cancelled by the mean subtraction.
    ks = jax.random.split(key, 9)
    p = {
        "w1": 0.1 * jax.random.normal(ks[0], (ch_out, ch_in, 3, 3), jnp.float32),
        "g1": 1.0 + 0.1 * jax.random.normal(ks[1], (ch_out,), jnp.float32),
        "be1": 0.1 * jax.random.normal(ks[2], (ch_out,), jnp.float32),
        "w2": 0.1 * jax.random.normal(ks[3], (ch_out, ch_out, 3, 3), jnp.float32),
        "g2": 1.0 + 0.1 * jax.random.normal(ks[4], (ch_out,), jnp.float32),
        "be2": 0.1 * jax.random.normal(ks[5], (ch_out,), jnp.float32),
    }
    if ch_in != ch_out:
        p.update({
            "ws": 0.1 * jax.random.normal(ks[6], (ch_out, ch_in, 1, 1), jnp.float32),
            "gs": 1.0 + 0.1 * jax.random.normal(ks[7], (ch_out,), jnp.float32),
            "bes": 0.1 * jax.random.normal(ks[8], (ch_out,), jnp.float32),
        })
    return p


def resblock_forward_nhwc(x_nhwc, params, ch_in, ch_out, stride):
    """NHWC -> NHWC core (use this to chain ResBlocks without transposes)."""
    n, h, w, _ = x_nhwc.shape
    ho = (h - 1) // stride + 1
    wo = (w - 1) // stride + 1
    with_proj = ch_in != ch_out
    if not with_proj:
        assert stride == 1, "identity shortcut requires stride == 1 (as in PyTorch)"

    vmem_limit = _vmem_limit_bytes()
    tb = _choose_tb(n, h, w, ho, wo, ch_in, ch_out, vmem_limit)
    count = n * ho * wo

    x_f32 = x_nhwc.astype(jnp.float32)
    w1m = _prep_w3x3(params["w1"])
    w2m = _prep_w3x3(params["w2"])
    wscm = _prep_w1x1(params["ws"]) if with_proj else None

    # Kernel A: conv1 (+ fused projection conv) -> raw outputs + partial stats.
    if stride == 2:
        # One-time parity (space-to-depth) split of the spatially padded input
        # so every in-kernel stride-2 tap is a (nearly) contiguous slice.
        x_pad = jnp.pad(x_f32, ((0, 0), (1, 1), (1, 1), (0, 0)))
        planes = [x_pad[:, ry::2, rx::2, :] for ry in (0, 1) for rx in (0, 1)]
        outs = _conv1_s2_call(planes, w1m, wscm, n, tb, ho, wo, ch_in, ch_out,
                              with_proj, vmem_limit)
    else:
        # Halo / zero-padding is built in-kernel (no jnp.pad round trip).
        outs = _conv1_s1_call(x_f32, w1m, wscm, n, tb, ho, wo, ch_in, ch_out,
                              with_proj, vmem_limit)
    if with_proj:
        y1, s1, ysc, ssc = outs
    else:
        y1, s1 = outs

    scale1, shift1 = _fold_bn(s1, count, params["g1"], params["be1"])

    # Kernel B: fused BN1 + ReLU + conv2 -> raw output + partial stats.
    y2, s2 = _conv2_call(y1, scale1, shift1, w2m, n, tb, ho, wo, ch_out,
                         vmem_limit)
    scale2, shift2 = _fold_bn(s2, count, params["g2"], params["be2"])

    # Shortcut normalization terms.
    if with_proj:
        scale_r, shift_r = _fold_bn(ssc, count, params["gs"], params["bes"])
        res = ysc
    else:
        res = x_f32                               # identity shortcut, unpadded
        scale_r = jnp.ones((1, ch_out), jnp.float32)
        shift_r = jnp.zeros((1, ch_out), jnp.float32)

    # Kernel C: BN2 + shortcut-BN + residual add + ReLU.
    return _bn_add_relu_call(y2, scale2, shift2, res, scale_r, shift_r,
                             n, tb, ho, wo, ch_out, vmem_limit)


def resblock_forward(x_nchw, params, ch_in, ch_out, stride):
    """NCHW -> NCHW wrapper matching the PyTorch module interface."""
    x_nhwc = jnp.transpose(x_nchw, (0, 2, 3, 1))
    out = resblock_forward_nhwc(x_nhwc, params, ch_in, ch_out, stride)
    return jnp.transpose(out, (0, 3, 1, 2))


# ------------------------------ pure-JAX reference --------------------------- #

def resblock_reference(x_nchw, params, ch_in, ch_out, stride):
    def conv(x, w, s, pad):
        return lax.conv_general_dilated(
            x, w, (s, s), pad, dimension_numbers=("NCHW", "OIHW", "NCHW"))

    def bn(y, gamma, beta):
        mean = jnp.mean(y, axis=(0, 2, 3), keepdims=True)
        var = jnp.mean((y - mean) ** 2, axis=(0, 2, 3), keepdims=True)
        yn = (y - mean) * lax.rsqrt(var + EPS)
        return yn * gamma.reshape(1, -1, 1, 1) + beta.reshape(1, -1, 1, 1)

    out = jax.nn.relu(bn(conv(x_nchw, params["w1"], stride, [(1, 1), (1, 1)]),
                         params["g1"], params["be1"]))
    out = bn(conv(out, params["w2"], 1, [(1, 1), (1, 1)]),
             params["g2"], params["be2"])
    if ch_in != ch_out:
        sc = bn(conv(x_nchw, params["ws"], stride, [(0, 0), (0, 0)]),
                params["gs"], params["bes"])
    else:
        sc = x_nchw
    return jax.nn.relu(out + sc)


if __name__ == "__main__":
    key = jax.random.PRNGKey(0)

    configs = [
        # (N, ch_in, ch_out, H, W, stride)
        (2, 4, 8, 16, 16, 2),   # projection shortcut (1x1 conv, stride 2)
        (2, 8, 8, 16, 16, 1),   # identity shortcut
    ]
    for i, (n, ci, co, h, w, s) in enumerate(configs):
        kx, kp = jax.random.split(jax.random.fold_in(key, i))
        x = jax.random.normal(kx, (n, ci, h, w), jnp.float32)   # NCHW like PyTorch
        params = init_resblock_params(kp, ci, co)

        fwd = jax.jit(resblock_forward, static_argnums=(2, 3, 4))
        out = jax.block_until_ready(fwd(x, params, ci, co, s))

        assert out.shape == (n, co, h // s, w // s)
        assert bool(jnp.all(out >= 0.0))        # final ReLU

        ref = resblock_reference(x, params, ci, co, s)
        err = float(jnp.max(jnp.abs(out - ref)))
        assert err < 0.1, f"config {i}: max abs error {err}"

    print("KERNEL_OK")
</pallas_src>

<mosaic_0001>
module attributes {stable_mosaic.version = 11 : i64} {
  func.func @_conv2_kernel(%arg0: i32, %arg1: memref<1x8x8x8xbf16, #tpu.memory_space<vmem>>, %arg2: memref<1x8xf32, #tpu.memory_space<vmem>>, %arg3: memref<1x8xf32, #tpu.memory_space<vmem>>, %arg4: memref<9x8x8xbf16, #tpu.memory_space<vmem>>, %arg5: memref<1x8x8x8xbf16, #tpu.memory_space<vmem>>, %arg6: memref<1x2x8xf32, #tpu.memory_space<vmem>>, %arg7: memref<1x10x10x8xf32, #tpu.memory_space<vmem>>, %arg8: memref<3x10x8x8xf32, #tpu.memory_space<vmem>>) attributes {dimension_semantics = [#tpu.dimension_semantics<parallel>], iteration_bounds = array<i64: 2>, scalar_prefetch = 0 : i64, scratch_operands = 2 : i64, tpu.core_type = #tpu.core_type<tc>, window_params = [{transform_indices = @transform_0, window_bounds = array<i64: 1, 8, 8, 8>}, {pipeline_mode = #tpu.pipeline_mode<synchronous>, transform_indices = @transform_1, window_bounds = array<i64: 1, 8>}, {pipeline_mode = #tpu.pipeline_mode<synchronous>, transform_indices = @transform_2, window_bounds = array<i64: 1, 8>}, {pipeline_mode = #tpu.pipeline_mode<synchronous>, transform_indices = @transform_3, window_bounds = array<i64: 9, 8, 8>}, {transform_indices = @transform_4, window_bounds = array<i64: 1, 8, 8, 8>}, {transform_indices = @transform_5, window_bounds = array<i64: 1, 2, 8>}]} {
    %c0 = arith.constant 0 : index
    %c0_0 = arith.constant 0 : index
    %c0_1 = arith.constant 0 : index
    %c0_2 = arith.constant 0 : index
    %0 = vector.load %arg1[%c0, %c0_0, %c0_1, %c0_2] : memref<1x8x8x8xbf16, #tpu.memory_space<vmem>>, vector<1x8x8x8xbf16>
    %1 = arith.extf %0 : vector<1x8x8x8xbf16> to vector<1x8x8x8xf32>
    %c0_3 = arith.constant 0 : index
    %c0_4 = arith.constant 0 : index
    %2 = vector.load %arg2[%c0_3, %c0_4] : memref<1x8xf32, #tpu.memory_space<vmem>>, vector<1x8xf32>
    %3 = vector.shape_cast %2 : vector<1x8xf32> to vector<1x1x1x8xf32>
    %4 = vector.broadcast %3 : vector<1x1x1x8xf32> to vector<1x8x8x8xf32>
    %5 = arith.mulf %1, %4 : vector<1x8x8x8xf32>
    %c0_5 = arith.constant 0 : index
    %c0_6 = arith.constant 0 : index
    %6 = vector.load %arg3[%c0_5, %c0_6] : memref<1x8xf32, #tpu.memory_space<vmem>>, vector<1x8xf32>
    %7 = vector.shape_cast %6 : vector<1x8xf32> to vector<1x1x1x8xf32>
    %8 = vector.broadcast %7 : vector<1x1x1x8xf32> to vector<1x8x8x8xf32>
    %9 = arith.addf %5, %8 : vector<1x8x8x8xf32>
    %cst = arith.constant 0.000000e+00 : f32
    %10 = vector.broadcast %cst : f32 to vector<1x8x8x8xf32>
    %11 = arith.maximumf %9, %10 : vector<1x8x8x8xf32>
    %cst_7 = arith.constant 0.000000e+00 : f32
    %12 = vector.broadcast %cst_7 : f32 to vector<1x1x10x8xf32>
    %c0_8 = arith.constant 0 : index
    %c0_9 = arith.constant 0 : index
    %c0_10 = arith.constant 0 : index
    %c0_11 = arith.constant 0 : index
    %13 = vector.load %arg7[%c0_8, %c0_9, %c0_10, %c0_11] : memref<1x10x10x8xf32, #tpu.memory_space<vmem>>, vector<1x1x10x8xf32>
    tpu.vector_store %arg7[%c0_8, %c0_9, %c0_10, %c0_11], %12 {strides = array<i32>} : memref<1x10x10x8xf32, #tpu.memory_space<vmem>>, vector<1x1x10x8xf32>,
    %cst_12 = arith.constant 0.000000e+00 : f32
    %14 = vector.broadcast %cst_12 : f32 to vector<1x1x10x8xf32>
    %c0_13 = arith.constant 0 : index
    %c9 = arith.constant 9 : index
    %c0_14 = arith.constant 0 : index
    %c0_15 = arith.constant 0 : index
    %15 = vector.load %arg7[%c0_13, %c9, %c0_14, %c0_15] : memref<1x10x10x8xf32, #tpu.memory_space<vmem>>, vector<1x1x10x8xf32>
    tpu.vector_store %arg7[%c0_13, %c9, %c0_14, %c0_15], %14 {strides = array<i32>} : memref<1x10x10x8xf32, #tpu.memory_space<vmem>>, vector<1x1x10x8xf32>,
    %cst_16 = arith.constant 0.000000e+00 : f32
    %16 = vector.broadcast %cst_16 : f32 to vector<1x10x1x8xf32>
    %c0_17 = arith.constant 0 : index
    %c0_18 = arith.constant 0 : index
    %c0_19 = arith.constant 0 : index
    %c0_20 = arith.constant 0 : index
    %17 = vector.load %arg7[%c0_17, %c0_18, %c0_19, %c0_20] : memref<1x10x10x8xf32, #tpu.memory_space<vmem>>, vector<1x10x1x8xf32>
    tpu.vector_store %arg7[%c0_17, %c0_18, %c0_19, %c0_20], %16 {strides = array<i32>} : memref<1x10x10x8xf32, #tpu.memory_space<vmem>>, vector<1x10x1x8xf32>,
    %cst_21 = arith.constant 0.000000e+00 : f32
    %18 = vector.broadcast %cst_21 : f32 to vector<1x10x1x8xf32>
    %c0_22 = arith.constant 0 : index
    %c0_23 = arith.constant 0 : index
    %c9_24 = arith.constant 9 : index
    %c0_25 = arith.constant 0 : index
    %19 = vector.load %arg7[%c0_22, %c0_23, %c9_24, %c0_25] : memref<1x10x10x8xf32, #tpu.memory_space<vmem>>, vector<1x10x1x8xf32>
    tpu.vector_store %arg7[%c0_22, %c0_23, %c9_24, %c0_25], %18 {strides = array<i32>} : memref<1x10x10x8xf32, #tpu.memory_space<vmem>>, vector<1x10x1x8xf32>,
    %c0_26 = arith.constant 0 : index
    %c1 = arith.constant 1 : index
    %c1_27 = arith.constant 1 : index
    %c0_28 = arith.constant 0 : index
    %20 = vector.load %arg7[%c0_26, %c1, %c1_27, %c0_28] : memref<1x10x10x8xf32, #tpu.memory_space<vmem>>, vector<1x8x8x8xf32>
    tpu.vector_store %arg7[%c0_26, %c1, %c1_27, %c0_28], %11 {strides = array<i32>} : memref<1x10x10x8xf32, #tpu.memory_space<vmem>>, vector<1x8x8x8xf32>,
    %c0_29 = arith.constant 0 : index
    %c0_30 = arith.constant 0 : index
    %c0_31 = arith.constant 0 : index
    %c0_32 = arith.constant 0 : index
    %21 = vector.load %arg7[%c0_29, %c0_30, %c0_31, %c0_32] : memref<1x10x10x8xf32, #tpu.memory_space<vmem>>, vector<1x10x8x8xf32>
    %c0_33 = arith.constant 0 : index
    %c0_34 = arith.constant 0 : index
    %c0_35 = arith.constant 0 : index
    %c0_36 = arith.constant 0 : index
    %22 = vector.load %arg8[%c0_33, %c0_34, %c0_35, %c0_36] : memref<3x10x8x8xf32, #tpu.memory_space<vmem>>, vector<1x10x8x8xf32>
    tpu.vector_store %arg8[%c0_33, %c0_34, %c0_35, %c0_36], %21 {strides = array<i32>} : memref<3x10x8x8xf32, #tpu.memory_space<vmem>>, vector<1x10x8x8xf32>,
    %c0_37 = arith.constant 0 : index
    %c0_38 = arith.constant 0 : index
    %c1_39 = arith.constant 1 : index
    %c0_40 = arith.constant 0 : index
    %23 = vector.load %arg7[%c0_37, %c0_38, %c1_39, %c0_40] : memref<1x10x10x8xf32, #tpu.memory_space<vmem>>, vector<1x10x8x8xf32>
    %c1_41 = arith.constant 1 : index
    %c0_42 = arith.constant 0 : index
    %c0_43 = arith.constant 0 : index
    %c0_44 = arith.constant 0 : index
    %24 = vector.load %arg8[%c1_41, %c0_42, %c0_43, %c0_44] : memref<3x10x8x8xf32, #tpu.memory_space<vmem>>, vector<1x10x8x8xf32>
    tpu.vector_store %arg8[%c1_41, %c0_42, %c0_43, %c0_44], %23 {strides = array<i32>} : memref<3x10x8x8xf32, #tpu.memory_space<vmem>>, vector<1x10x8x8xf32>,
    %c0_45 = arith.constant 0 : index
    %c0_46 = arith.constant 0 : index
    %c2 = arith.constant 2 : index
    %c0_47 = arith.constant 0 : index
    %25 = vector.load %arg7[%c0_45, %c0_46, %c2, %c0_47] : memref<1x10x10x8xf32, #tpu.memory_space<vmem>>, vector<1x10x8x8xf32>
    %c2_48 = arith.constant 2 : index
    %c0_49 = arith.constant 0 : index
    %c0_50 = arith.constant 0 : index
    %c0_51 = arith.constant 0 : index
    %26 = vector.load %arg8[%c2_48, %c0_49, %c0_50, %c0_51] : memref<3x10x8x8xf32, #tpu.memory_space<vmem>>, vector<1x10x8x8xf32>
    tpu.vector_store %arg8[%c2_48, %c0_49, %c0_50, %c0_51], %25 {strides = array<i32>} : memref<3x10x8x8xf32, #tpu.memory_space<vmem>>, vector<1x10x8x8xf32>,
    %c0_52 = arith.constant 0 : index
    %c0_53 = arith.constant 0 : index
    %c0_54 = arith.constant 0 : index
    %c0_55 = arith.constant 0 : index
    %27 = vector.load %arg8[%c0_52, %c0_53, %c0_54, %c0_55] : memref<3x10x8x8xf32, #tpu.memory_space<vmem>>, vector<1x8x8x8xf32>
    %28 = vector.shape_cast %27 : vector<1x8x8x8xf32> to vector<64x8xf32>
    %29 = arith.truncf %28 : vector<64x8xf32> to vector<64x8xbf16>
    %c0_56 = arith.constant 0 : index
    %c0_57 = arith.constant 0 : index
    %c0_58 = arith.constant 0 : index
    %30 = vector.load %arg4[%c0_56, %c0_57, %c0_58] : memref<9x8x8xbf16, #tpu.memory_space<vmem>>, vector<1x8x8xbf16>
    %31 = vector.shape_cast %30 : vector<1x8x8xbf16> to vector<8x8xbf16>
    %cst_59 = arith.constant dense<0.000000e+00> : vector<64x8xf32>
    %32 = tpu.matmul %29, %31, %cst_59 {dimension_numbers = #tpu.dot_dimension_numbers<[1], [0], [0], [1], [0, 0, 1, 1], [], []>} : vector<64x8xbf16>, vector<8x8xbf16>, vector<64x8xf32> -> vector<64x8xf32>
    %c1_60 = arith.constant 1 : index
    %c0_61 = arith.constant 0 : index
    %c0_62 = arith.constant 0 : index
    %c0_63 = arith.constant 0 : index
    %33 = vector.load %arg8[%c1_60, %c0_61, %c0_62, %c0_63] : memref<3x10x8x8xf32, #tpu.memory_space<vmem>>, vector<1x8x8x8xf32>
    %34 = vector.shape_cast %33 : vector<1x8x8x8xf32> to vector<64x8xf32>
    %35 = arith.truncf %34 : vector<64x8xf32> to vector<64x8xbf16>
    %c1_64 = arith.constant 1 : index
    %c0_65 = arith.constant 0 : index
    %c0_66 = arith.constant 0 : index
    %36 = vector.load %arg4[%c1_64, %c0_65, %c0_66] : memref<9x8x8xbf16, #tpu.memory_space<vmem>>, vector<1x8x8xbf16>
    %37 = vector.shape_cast %36 : vector<1x8x8xbf16> to vector<8x8xbf16>
    %cst_67 = arith.constant dense<0.000000e+00> : vector<64x8xf32>
    %38 = tpu.matmul %35, %37, %cst_67 {dimension_numbers = #tpu.dot_dimension_numbers<[1], [0], [0], [1], [0, 0, 1, 1], [], []>} : vector<64x8xbf16>, vector<8x8xbf16>, vector<64x8xf32> -> vector<64x8xf32>
    %39 = arith.addf %32, %38 : vector<64x8xf32>
    %c2_68 = arith.constant 2 : index
    %c0_69 = arith.constant 0 : index
    %c0_70 = arith.constant 0 : index
    %c0_71 = arith.constant 0 : index
    %40 = vector.load %arg8[%c2_68, %c0_69, %c0_70, %c0_71] : memref<3x10x8x8xf32, #tpu.memory_space<vmem>>, vector<1x8x8x8xf32>
    %41 = vector.shape_cast %40 : vector<1x8x8x8xf32> to vector<64x8xf32>
    %42 = arith.truncf %41 : vector<64x8xf32> to vector<64x8xbf16>
    %c2_72 = arith.constant 2 : index
    %c0_73 = arith.constant 0 : index
    %c0_74 = arith.constant 0 : index
    %43 = vector.load %arg4[%c2_72, %c0_73, %c0_74] : memref<9x8x8xbf16, #tpu.memory_space<vmem>>, vector<1x8x8xbf16>
    %44 = vector.shape_cast %43 : vector<1x8x8xbf16> to vector<8x8xbf16>
    %cst_75 = arith.constant dense<0.000000e+00> : vector<64x8xf32>
    %45 = tpu.matmul %42, %44, %cst_75 {dimension_numbers = #tpu.dot_dimension_numbers<[1], [0], [0], [1], [0, 0, 1, 1], [], []>} : vector<64x8xbf16>, vector<8x8xbf16>, vector<64x8xf32> -> vector<64x8xf32>
    %46 = arith.addf %39, %45 : vector<64x8xf32>
    %c0_76 = arith.constant 0 : index
    %c1_77 = arith.constant 1 : index
    %c0_78 = arith.constant 0 : index
    %c0_79 = arith.constant 0 : index
    %47 = vector.load %arg8[%c0_76, %c1_77, %c0_78, %c0_79] : memref<3x10x8x8xf32, #tpu.memory_space<vmem>>, vector<1x8x8x8xf32>
    %48 = vector.shape_cast %47 : vector<1x8x8x8xf32> to vector<64x8xf32>
    %49 = arith.truncf %48 : vector<64x8xf32> to vector<64x8xbf16>
    %c3 = arith.constant 3 : index
    %c0_80 = arith.constant 0 : index
    %c0_81 = arith.constant 0 : index
    %50 = vector.load %arg4[%c3, %c0_80, %c0_81] : memref<9x8x8xbf16, #tpu.memory_space<vmem>>, vector<1x8x8xbf16>
    %51 = vector.shape_cast %50 : vector<1x8x8xbf16> to vector<8x8xbf16>
    %cst_82 = arith.constant dense<0.000000e+00> : vector<64x8xf32>
    %52 = tpu.matmul %49, %51, %cst_82 {dimension_numbers = #tpu.dot_dimension_numbers<[1], [0], [0], [1], [0, 0, 1, 1], [], []>} : vector<64x8xbf16>, vector<8x8xbf16>, vector<64x8xf32> -> vector<64x8xf32>
    %53 = arith.addf %46, %52 : vector<64x8xf32>
    %c1_83 = arith.constant 1 : index
    %c1_84 = arith.constant 1 : index
    %c0_85 = arith.constant 0 : index
    %c0_86 = arith.constant 0 : index
    %54 = vector.load %arg8[%c1_83, %c1_84, %c0_85, %c0_86] : memref<3x10x8x8xf32, #tpu.memory_space<vmem>>, vector<1x8x8x8xf32>
    %55 = vector.shape_cast %54 : vector<1x8x8x8xf32> to vector<64x8xf32>
    %56 = arith.truncf %55 : vector<64x8xf32> to vector<64x8xbf16>
    %c4 = arith.constant 4 : index
    %c0_87 = arith.constant 0 : index
    %c0_88 = arith.constant 0 : index
    %57 = vector.load %arg4[%c4, %c0_87, %c0_88] : memref<9x8x8xbf16, #tpu.memory_space<vmem>>, vector<1x8x8xbf16>
    %58 = vector.shape_cast %57 : vector<1x8x8xbf16> to vector<8x8xbf16>
    %cst_89 = arith.constant dense<0.000000e+00> : vector<64x8xf32>
    %59 = tpu.matmul %56, %58, %cst_89 {dimension_numbers = #tpu.dot_dimension_numbers<[1], [0], [0], [1], [0, 0, 1, 1], [], []>} : vector<64x8xbf16>, vector<8x8xbf16>, vector<64x8xf32> -> vector<64x8xf32>
    %60 = arith.addf %53, %59 : vector<64x8xf32>
    %c2_90 = arith.constant 2 : index
    %c1_91 = arith.constant 1 : index
    %c0_92 = arith.constant 0 : index
    %c0_93 = arith.constant 0 : index
    %61 = vector.load %arg8[%c2_90, %c1_91, %c0_92, %c0_93] : memref<3x10x8x8xf32, #tpu.memory_space<vmem>>, vector<1x8x8x8xf32>
    %62 = vector.shape_cast %61 : vector<1x8x8x8xf32> to vector<64x8xf32>
    %63 = arith.truncf %62 : vector<64x8xf32> to vector<64x8xbf16>
    %c5 = arith.constant 5 : index
    %c0_94 = arith.constant 0 : index
    %c0_95 = arith.constant 0 : index
    %64 = vector.load %arg4[%c5, %c0_94, %c0_95] : memref<9x8x8xbf16, #tpu.memory_space<vmem>>, vector<1x8x8xbf16>
    %65 = vector.shape_cast %64 : vector<1x8x8xbf16> to vector<8x8xbf16>
    %cst_96 = arith.constant dense<0.000000e+00> : vector<64x8xf32>
    %66 = tpu.matmul %63, %65, %cst_96 {dimension_numbers = #tpu.dot_dimension_numbers<[1], [0], [0], [1], [0, 0, 1, 1], [], []>} : vector<64x8xbf16>, vector<8x8xbf16>, vector<64x8xf32> -> vector<64x8xf32>
    %67 = arith.addf %60, %66 : vector<64x8xf32>
    %c0_97 = arith.constant 0 : index
    %c2_98 = arith.constant 2 : index
    %c0_99 = arith.constant 0 : index
    %c0_100 = arith.constant 0 : index
    %68 = vector.load %arg8[%c0_97, %c2_98, %c0_99, %c0_100] : memref<3x10x8x8xf32, #tpu.memory_space<vmem>>, vector<1x8x8x8xf32>
    %69 = vector.shape_cast %68 : vector<1x8x8x8xf32> to vector<64x8xf32>
    %70 = arith.truncf %69 : vector<64x8xf32> to vector<64x8xbf16>
    %c6 = arith.constant 6 : index
    %c0_101 = arith.constant 0 : index
    %c0_102 = arith.constant 0 : index
    %71 = vector.load %arg4[%c6, %c0_101, %c0_102] : memref<9x8x8xbf16, #tpu.memory_space<vmem>>, vector<1x8x8xbf16>
    %72 = vector.shape_cast %71 : vector<1x8x8xbf16> to vector<8x8xbf16>
    %cst_103 = arith.constant dense<0.000000e+00> : vector<64x8xf32>
    %73 = tpu.matmul %70, %72, %cst_103 {dimension_numbers = #tpu.dot_dimension_numbers<[1], [0], [0], [1], [0, 0, 1, 1], [], []>} : vector<64x8xbf16>, vector<8x8xbf16>, vector<64x8xf32> -> vector<64x8xf32>
    %74 = arith.addf %67, %73 : vector<64x8xf32>
    %c1_104 = arith.constant 1 : index
    %c2_105 = arith.constant 2 : index
    %c0_106 = arith.constant 0 : index
    %c0_107 = arith.constant 0 : index
    %75 = vector.load %arg8[%c1_104, %c2_105, %c0_106, %c0_107] : memref<3x10x8x8xf32, #tpu.memory_space<vmem>>, vector<1x8x8x8xf32>
    %76 = vector.shape_cast %75 : vector<1x8x8x8xf32> to vector<64x8xf32>
    %77 = arith.truncf %76 : vector<64x8xf32> to vector<64x8xbf16>
    %c7 = arith.constant 7 : index
    %c0_108 = arith.constant 0 : index
    %c0_109 = arith.constant 0 : index
    %78 = vector.load %arg4[%c7, %c0_108, %c0_109] : memref<9x8x8xbf16, #tpu.memory_space<vmem>>, vector<1x8x8xbf16>
    %79 = vector.shape_cast %78 : vector<1x8x8xbf16> to vector<8x8xbf16>
    %cst_110 = arith.constant dense<0.000000e+00> : vector<64x8xf32>
    %80 = tpu.matmul %77, %79, %cst_110 {dimension_numbers = #tpu.dot_dimension_numbers<[1], [0], [0], [1], [0, 0, 1, 1], [], []>} : vector<64x8xbf16>, vector<8x8xbf16>, vector<64x8xf32> -> vector<64x8xf32>
    %81 = arith.addf %74, %80 : vector<64x8xf32>
    %c2_111 = arith.constant 2 : index
    %c2_112 = arith.constant 2 : index
    %c0_113 = arith.constant 0 : index
    %c0_114 = arith.constant 0 : index
    %82 = vector.load %arg8[%c2_111, %c2_112, %c0_113, %c0_114] : memref<3x10x8x8xf32, #tpu.memory_space<vmem>>, vector<1x8x8x8xf32>
    %83 = vector.shape_cast %82 : vector<1x8x8x8xf32> to vector<64x8xf32>
    %84 = arith.truncf %83 : vector<64x8xf32> to vector<64x8xbf16>
    %c8 = arith.constant 8 : index
    %c0_115 = arith.constant 0 : index
    %c0_116 = arith.constant 0 : index
    %85 = vector.load %arg4[%c8, %c0_115, %c0_116] : memref<9x8x8xbf16, #tpu.memory_space<vmem>>, vector<1x8x8xbf16>
    %86 = vector.shape_cast %85 : vector<1x8x8xbf16> to vector<8x8xbf16>
    %cst_117 = arith.constant dense<0.000000e+00> : vector<64x8xf32>
    %87 = tpu.matmul %84, %86, %cst_117 {dimension_numbers = #tpu.dot_dimension_numbers<[1], [0], [0], [1], [0, 0, 1, 1], [], []>} : vector<64x8xbf16>, vector<8x8xbf16>, vector<64x8xf32> -> vector<64x8xf32>
    %88 = arith.addf %81, %87 : vector<64x8xf32>
    %89 = vector.shape_cast %88 : vector<64x8xf32> to vector<1x8x8x8xf32>
    %90 = arith.truncf %89 : vector<1x8x8x8xf32> to vector<1x8x8x8xbf16>
    %c0_118 = arith.constant 0 : index
    %c0_119 = arith.constant 0 : index
    %c0_120 = arith.constant 0 : index
    %c0_121 = arith.constant 0 : index
    %91 = vector.load %arg5[%c0_118, %c0_119, %c0_120, %c0_121] : memref<1x8x8x8xbf16, #tpu.memory_space<vmem>>, vector<1x8x8x8xbf16>
    tpu.vector_store %arg5[%c0_118, %c0_119, %c0_120, %c0_121], %90 {strides = array<i32>} : memref<1x8x8x8xbf16, #tpu.memory_space<vmem>>, vector<1x8x8x8xbf16>,
    %cst_122 = arith.constant dense<0.000000e+00> : vector<8xf32>
    %92 = vector.multi_reduction <add>, %88, %cst_122 [0] : vector<64x8xf32> to vector<8xf32>
    %93 = vector.shape_cast %92 : vector<8xf32> to vector<1x8xf32>
    %94 = vector.shape_cast %93 : vector<1x8xf32> to vector<1x1x8xf32>
    %c0_123 = arith.constant 0 : index
    %c0_124 = arith.constant 0 : index
    %c0_125 = arith.constant 0 : index
    %95 = vector.load %arg6[%c0_123, %c0_124, %c0_125] : memref<1x2x8xf32, #tpu.memory_space<vmem>>, vector<1x1x8xf32>
    tpu.vector_store %arg6[%c0_123, %c0_124, %c0_125], %94 {strides = array<i32>} : memref<1x2x8xf32, #tpu.memory_space<vmem>>, vector<1x1x8xf32>,
    %96 = arith.mulf %88, %88 : vector<64x8xf32>
    %cst_126 = arith.constant dense<0.000000e+00> : vector<8xf32>
    %97 = vector.multi_reduction <add>, %96, %cst_126 [0] : vector<64x8xf32> to vector<8xf32>
    %98 = vector.shape_cast %97 : vector<8xf32> to vector<1x8xf32>
    %99 = vector.shape_cast %98 : vector<1x8xf32> to vector<1x1x8xf32>
    %c0_127 = arith.constant 0 : index
    %c1_128 = arith.constant 1 : index
    %c0_129 = arith.constant 0 : index
    %100 = vector.load %arg6[%c0_127, %c1_128, %c0_129] : memref<1x2x8xf32, #tpu.memory_space<vmem>>, vector<1x1x8xf32>
    tpu.vector_store %arg6[%c0_127, %c1_128, %c0_129], %99 {strides = array<i32>} : memref<1x2x8xf32, #tpu.memory_space<vmem>>, vector<1x1x8xf32>,
    return
  }
  func.func @transform_0(%arg0: i32) -> (i32, i32, i32, i32) {
    %c0_i32 = arith.constant 0 : i32
    %c0_i32_0 = arith.constant 0 : i32
    %c0_i32_1 = arith.constant 0 : i32
    %c0_i32_2 = arith.constant 0 : i32
    return %arg0, %c0_i32, %c0_i32_0, %c0_i32_1 : i32, i32, i32, i32
  }
  func.func @transform_1(%arg0: i32) -> (i32, i32) {
    %c0_i32 = arith.constant 0 : i32
    %c0_i32_0 = arith.constant 0 : i32
    %c0_i32_1 = arith.constant 0 : i32
    return %c0_i32, %c0_i32_0 : i32, i32
  }
  func.func @transform_2(%arg0: i32) -> (i32, i32) {
    %c0_i32 = arith.constant 0 : i32
    %c0_i32_0 = arith.constant 0 : i32
    %c0_i32_1 = arith.constant 0 : i32
    return %c0_i32, %c0_i32_0 : i32, i32
  }
  func.func @transform_3(%arg0: i32) -> (i32, i32, i32) {
    %c0_i32 = arith.constant 0 : i32
    %c0_i32_0 = arith.constant 0 : i32
    %c0_i32_1 = arith.constant 0 : i32
    %c0_i32_2 = arith.constant 0 : i32
    return %c0_i32, %c0_i32_0, %c0_i32_1 : i32, i32, i32
  }
  func.func @transform_4(%arg0: i32) -> (i32, i32, i32, i32) {
    %c0_i32 = arith.constant 0 : i32
    %c0_i32_0 = arith.constant 0 : i32
    %c0_i32_1 = arith.constant 0 : i32
    %c0_i32_2 = arith.constant 0 : i32
    return %arg0, %c0_i32, %c0_i32_0, %c0_i32_1 : i32, i32, i32, i32
  }
  func.func @transform_5(%arg0: i32) -> (i32, i32, i32) {
    %c0_i32 = arith.constant 0 : i32
    %c0_i32_0 = arith.constant 0 : i32
    %c0_i32_1 = arith.constant 0 : i32
    return %arg0, %c0_i32, %c0_i32_0 : i32, i32, i32
  }
}

module attributes {stable_mosaic.version = 11 : i64} {
  func.func @_bn_add_relu_kernel(%arg0: i32, %arg1: memref<1x8x8x8xbf16, #tpu.memory_space<vmem>>, %arg2: memref<1x8xf32, #tpu.memory_space<vmem>>, %arg3: memref<1x8xf32, #tpu.memory_space<vmem>>, %arg4: memref<1x8x8x8xbf16, #tpu.memory_space<vmem>>, %arg5: memref<1x8xf32, #tpu.memory_space<vmem>>, %arg6: memref<1x8xf32, #tpu.memory_space<vmem>>, %arg7: memref<1x8x8x8xf32, #tpu.memory_space<vmem>>) attributes {dimension_semantics = [#tpu.dimension_semantics<parallel>], iteration_bounds = array<i64: 2>, scalar_prefetch = 0 : i64, scratch_operands = 0 : i64, tpu.core_type = #tpu.core_type<tc>, window_params = [{transform_indices = @transform_0, window_bounds = array<i64: 1, 8, 8, 8>}, {pipeline_mode = #tpu.pipeline_mode<synchronous>, transform_indices = @transform_1, window_bounds = array<i64: 1, 8>}, {pipeline_mode = #tpu.pipeline_mode<synchronous>, transform_indices = @transform_2, window_bounds = array<i64: 1, 8>}, {transform_indices = @transform_3, window_bounds = array<i64: 1, 8, 8, 8>}, {pipeline_mode = #tpu.pipeline_mode<synchronous>, transform_indices = @transform_4, window_bounds = array<i64: 1, 8>}, {pipeline_mode = #tpu.pipeline_mode<synchronous>, transform_indices = @transform_5, window_bounds = array<i64: 1, 8>}, {transform_indices = @transform_6, window_bounds = array<i64: 1, 8, 8, 8>}]} {
    %c0 = arith.constant 0 : index
    %c0_0 = arith.constant 0 : index
    %c0_1 = arith.constant 0 : index
    %c0_2 = arith.constant 0 : index
    %0 = vector.load %arg1[%c0, %c0_0, %c0_1, %c0_2] : memref<1x8x8x8xbf16, #tpu.memory_space<vmem>>, vector<1x8x8x8xbf16>
    %1 = arith.extf %0 : vector<1x8x8x8xbf16> to vector<1x8x8x8xf32>
    %c0_3 = arith.constant 0 : index
    %c0_4 = arith.constant 0 : index
    %2 = vector.load %arg2[%c0_3, %c0_4] : memref<1x8xf32, #tpu.memory_space<vmem>>, vector<1x8xf32>
    %3 = vector.shape_cast %2 : vector<1x8xf32> to vector<1x1x1x8xf32>
    %4 = vector.broadcast %3 : vector<1x1x1x8xf32> to vector<1x8x8x8xf32>
    %5 = arith.mulf %1, %4 : vector<1x8x8x8xf32>
    %c0_5 = arith.constant 0 : index
    %c0_6 = arith.constant 0 : index
    %6 = vector.load %arg3[%c0_5, %c0_6] : memref<1x8xf32, #tpu.memory_space<vmem>>, vector<1x8xf32>
    %7 = vector.shape_cast %6 : vector<1x8xf32> to vector<1x1x1x8xf32>
    %8 = vector.broadcast %7 : vector<1x1x1x8xf32> to vector<1x8x8x8xf32>
    %9 = arith.addf %5, %8 : vector<1x8x8x8xf32>
    %c0_7 = arith.constant 0 : index
    %c0_8 = arith.constant 0 : index
    %c0_9 = arith.constant 0 : index
    %c0_10 = arith.constant 0 : index
    %10 = vector.load %arg4[%c0_7, %c0_8, %c0_9, %c0_10] : memref<1x8x8x8xbf16, #tpu.memory_space<vmem>>, vector<1x8x8x8xbf16>
    %11 = arith.extf %10 : vector<1x8x8x8xbf16> to vector<1x8x8x8xf32>
    %c0_11 = arith.constant 0 : index
    %c0_12 = arith.constant 0 : index
    %12 = vector.load %arg5[%c0_11, %c0_12] : memref<1x8xf32, #tpu.memory_space<vmem>>, vector<1x8xf32>
    %13 = vector.shape_cast %12 : vector<1x8xf32> to vector<1x1x1x8xf32>
    %14 = vector.broadcast %13 : vector<1x1x1x8xf32> to vector<1x8x8x8xf32>
    %15 = arith.mulf %11, %14 : vector<1x8x8x8xf32>
    %c0_13 = arith.constant 0 : index
    %c0_14 = arith.constant 0 : index
    %16 = vector.load %arg6[%c0_13, %c0_14] : memref<1x8xf32, #tpu.memory_space<vmem>>, vector<1x8xf32>
    %17 = vector.shape_cast %16 : vector<1x8xf32> to vector<1x1x1x8xf32>
    %18 = vector.broadcast %17 : vector<1x1x1x8xf32> to vector<1x8x8x8xf32>
    %19 = arith.addf %15, %18 : vector<1x8x8x8xf32>
    %20 = arith.addf %9, %19 : vector<1x8x8x8xf32>
    %cst = arith.constant 0.000000e+00 : f32
    %21 = vector.broadcast %cst : f32 to vector<1x8x8x8xf32>
    %22 = arith.maximumf %20, %21 : vector<1x8x8x8xf32>
    %c0_15 = arith.constant 0 : index
    %c0_16 = arith.constant 0 : index
    %c0_17 = arith.constant 0 : index
    %c0_18 = arith.constant 0 : index
    %23 = vector.load %arg7[%c0_15, %c0_16, %c0_17, %c0_18] : memref<1x8x8x8xf32, #tpu.memory_space<vmem>>, vector<1x8x8x8xf32>
    tpu.vector_store %arg7[%c0_15, %c0_16, %c0_17, %c0_18], %22 {strides = array<i32>} : memref<1x8x8x8xf32, #tpu.memory_space<vmem>>, vector<1x8x8x8xf32>,
    return
  }
  func.func @transform_0(%arg0: i32) -> (i32, i32, i32, i32) {
    %c0_i32 = arith.constant 0 : i32
    %c0_i32_0 = arith.constant 0 : i32
    %c0_i32_1 = arith.constant 0 : i32
    %c0_i32_2 = arith.constant 0 : i32
    return %arg0, %c0_i32, %c0_i32_0, %c0_i32_1 : i32, i32, i32, i32
  }
  func.func @transform_1(%arg0: i32) -> (i32, i32) {
    %c0_i32 = arith.constant 0 : i32
    %c0_i32_0 = arith.constant 0 : i32
    %c0_i32_1 = arith.constant 0 : i32
    return %c0_i32, %c0_i32_0 : i32, i32
  }
  func.func @transform_2(%arg0: i32) -> (i32, i32) {
    %c0_i32 = arith.constant 0 : i32
    %c0_i32_0 = arith.constant 0 : i32
    %c0_i32_1 = arith.constant 0 : i32
    return %c0_i32, %c0_i32_0 : i32, i32
  }
  func.func @transform_3(%arg0: i32) -> (i32, i32, i32, i32) {
    %c0_i32 = arith.constant 0 : i32
    %c0_i32_0 = arith.constant 0 : i32
    %c0_i32_1 = arith.constant 0 : i32
    %c0_i32_2 = arith.constant 0 : i32
    return %arg0, %c0_i32, %c0_i32_0, %c0_i32_1 : i32, i32, i32, i32
  }
  func.func @transform_4(%arg0: i32) -> (i32, i32) {
    %c0_i32 = arith.constant 0 : i32
    %c0_i32_0 = arith.constant 0 : i32
    %c0_i32_1 = arith.constant 0 : i32
    return %c0_i32, %c0_i32_0 : i32, i32
  }
  func.func @transform_5(%arg0: i32) -> (i32, i32) {
    %c0_i32 = arith.constant 0 : i32
    %c0_i32_0 = arith.constant 0 : i32
    %c0_i32_1 = arith.constant 0 : i32
    return %c0_i32, %c0_i32_0 : i32, i32
  }
  func.func @transform_6(%arg0: i32) -> (i32, i32, i32, i32) {
    %c0_i32 = arith.constant 0 : i32
    %c0_i32_0 = arith.constant 0 : i32
    %c0_i32_1 = arith.constant 0 : i32
    %c0_i32_2 = arith.constant 0 : i32
    return %arg0, %c0_i32, %c0_i32_0, %c0_i32_1 : i32, i32, i32, i32
  }
}

module attributes {stable_mosaic.version = 11 : i64} {
  func.func @_conv1_s2_kernel(%arg0: i32, %arg1: memref<1x9x9x4xf32, #tpu.memory_space<vmem>>, %arg2: memref<1x9x9x4xf32, #tpu.memory_space<vmem>>, %arg3: memref<1x9x9x4xf32, #tpu.memory_space<vmem>>, %arg4: memref<1x9x9x4xf32, #tpu.memory_space<vmem>>, %arg5: memref<9x4x8xbf16, #tpu.memory_space<vmem>>, %arg6: memref<4x8xbf16, #tpu.memory_space<vmem>>, %arg7: memref<1x8x8x8xbf16, #tpu.memory_space<vmem>>, %arg8: memref<1x2x8xf32, #tpu.memory_space<vmem>>, %arg9: memref<1x8x8x8xbf16, #tpu.memory_space<vmem>>, %arg10: memref<1x2x8xf32, #tpu.memory_space<vmem>>) attributes {dimension_semantics = [#tpu.dimension_semantics<parallel>], iteration_bounds = array<i64: 2>, scalar_prefetch = 0 : i64, scratch_operands = 0 : i64, tpu.core_type = #tpu.core_type<tc>, window_params = [{transform_indices = @transform_0, window_bounds = array<i64: 1, 9, 9, 4>}, {transform_indices = @transform_1, window_bounds = array<i64: 1, 9, 9, 4>}, {transform_indices = @transform_2, window_bounds = array<i64: 1, 9, 9, 4>}, {transform_indices = @transform_3, window_bounds = array<i64: 1, 9, 9, 4>}, {pipeline_mode = #tpu.pipeline_mode<synchronous>, transform_indices = @transform_4, window_bounds = array<i64: 9, 4, 8>}, {pipeline_mode = #tpu.pipeline_mode<synchronous>, transform_indices = @transform_5, window_bounds = array<i64: 4, 8>}, {transform_indices = @transform_6, window_bounds = array<i64: 1, 8, 8, 8>}, {transform_indices = @transform_7, window_bounds = array<i64: 1, 2, 8>}, {transform_indices = @transform_8, window_bounds = array<i64: 1, 8, 8, 8>}, {transform_indices = @transform_9, window_bounds = array<i64: 1, 2, 8>}]} {
    %c0 = arith.constant 0 : index
    %c0_0 = arith.constant 0 : index
    %c0_1 = arith.constant 0 : index
    %c0_2 = arith.constant 0 : index
    %0 = vector.load %arg1[%c0, %c0_0, %c0_1, %c0_2] : memref<1x9x9x4xf32, #tpu.memory_space<vmem>>, vector<1x8x8x4xf32>
    %1 = vector.shape_cast %0 : vector<1x8x8x4xf32> to vector<64x4xf32>
    %2 = arith.truncf %1 : vector<64x4xf32> to vector<64x4xbf16>
    %c0_3 = arith.constant 0 : index
    %c0_4 = arith.constant 0 : index
    %c0_5 = arith.constant 0 : index
    %3 = vector.load %arg5[%c0_3, %c0_4, %c0_5] : memref<9x4x8xbf16, #tpu.memory_space<vmem>>, vector<1x4x8xbf16>
    %4 = vector.shape_cast %3 : vector<1x4x8xbf16> to vector<4x8xbf16>
    %cst = arith.constant dense<0.000000e+00> : vector<64x8xf32>
    %5 = tpu.matmul %2, %4, %cst {dimension_numbers = #tpu.dot_dimension_numbers<[1], [0], [0], [1], [0, 0, 1, 1], [], []>} : vector<64x4xbf16>, vector<4x8xbf16>, vector<64x8xf32> -> vector<64x8xf32>
    %c0_6 = arith.constant 0 : index
    %c0_7 = arith.constant 0 : index
    %c0_8 = arith.constant 0 : index
    %c0_9 = arith.constant 0 : index
    %6 = vector.load %arg2[%c0_6, %c0_7, %c0_8, %c0_9] : memref<1x9x9x4xf32, #tpu.memory_space<vmem>>, vector<1x8x8x4xf32>
    %7 = vector.shape_cast %6 : vector<1x8x8x4xf32> to vector<64x4xf32>
    %8 = arith.truncf %7 : vector<64x4xf32> to vector<64x4xbf16>
    %c1 = arith.constant 1 : index
    %c0_10 = arith.constant 0 : index
    %c0_11 = arith.constant 0 : index
    %9 = vector.load %arg5[%c1, %c0_10, %c0_11] : memref<9x4x8xbf16, #tpu.memory_space<vmem>>, vector<1x4x8xbf16>
    %10 = vector.shape_cast %9 : vector<1x4x8xbf16> to vector<4x8xbf16>
    %cst_12 = arith.constant dense<0.000000e+00> : vector<64x8xf32>
    %11 = tpu.matmul %8, %10, %cst_12 {dimension_numbers = #tpu.dot_dimension_numbers<[1], [0], [0], [1], [0, 0, 1, 1], [], []>} : vector<64x4xbf16>, vector<4x8xbf16>, vector<64x8xf32> -> vector<64x8xf32>
    %12 = arith.addf %5, %11 : vector<64x8xf32>
    %c0_13 = arith.constant 0 : index
    %c0_14 = arith.constant 0 : index
    %c1_15 = arith.constant 1 : index
    %c0_16 = arith.constant 0 : index
    %13 = vector.load %arg1[%c0_13, %c0_14, %c1_15, %c0_16] : memref<1x9x9x4xf32, #tpu.memory_space<vmem>>, vector<1x8x8x4xf32>
    %14 = vector.shape_cast %13 : vector<1x8x8x4xf32> to vector<64x4xf32>
    %15 = arith.truncf %14 : vector<64x4xf32> to vector<64x4xbf16>
    %c2 = arith.constant 2 : index
    %c0_17 = arith.constant 0 : index
    %c0_18 = arith.constant 0 : index
    %16 = vector.load %arg5[%c2, %c0_17, %c0_18] : memref<9x4x8xbf16, #tpu.memory_space<vmem>>, vector<1x4x8xbf16>
    %17 = vector.shape_cast %16 : vector<1x4x8xbf16> to vector<4x8xbf16>
    %cst_19 = arith.constant dense<0.000000e+00> : vector<64x8xf32>
    %18 = tpu.matmul %15, %17, %cst_19 {dimension_numbers = #tpu.dot_dimension_numbers<[1], [0], [0], [1], [0, 0, 1, 1], [], []>} : vector<64x4xbf16>, vector<4x8xbf16>, vector<64x8xf32> -> vector<64x8xf32>
    %19 = arith.addf %12, %18 : vector<64x8xf32>
    %c0_20 = arith.constant 0 : index
    %c0_21 = arith.constant 0 : index
    %c0_22 = arith.constant 0 : index
    %c0_23 = arith.constant 0 : index
    %20 = vector.load %arg3[%c0_20, %c0_21, %c0_22, %c0_23] : memref<1x9x9x4xf32, #tpu.memory_space<vmem>>, vector<1x8x8x4xf32>
    %21 = vector.shape_cast %20 : vector<1x8x8x4xf32> to vector<64x4xf32>
    %22 = arith.truncf %21 : vector<64x4xf32> to vector<64x4xbf16>
    %c3 = arith.constant 3 : index
    %c0_24 = arith.constant 0 : index
    %c0_25 = arith.constant 0 : index
    %23 = vector.load %arg5[%c3, %c0_24, %c0_25] : memref<9x4x8xbf16, #tpu.memory_space<vmem>>, vector<1x4x8xbf16>
    %24 = vector.shape_cast %23 : vector<1x4x8xbf16> to vector<4x8xbf16>
    %cst_26 = arith.constant dense<0.000000e+00> : vector<64x8xf32>
    %25 = tpu.matmul %22, %24, %cst_26 {dimension_numbers = #tpu.dot_dimension_numbers<[1], [0], [0], [1], [0, 0, 1, 1], [], []>} : vector<64x4xbf16>, vector<4x8xbf16>, vector<64x8xf32> -> vector<64x8xf32>
    %26 = arith.addf %19, %25 : vector<64x8xf32>
    %c0_27 = arith.constant 0 : index
    %c0_28 = arith.constant 0 : index
    %c0_29 = arith.constant 0 : index
    %c0_30 = arith.constant 0 : index
    %27 = vector.load %arg4[%c0_27, %c0_28, %c0_29, %c0_30] : memref<1x9x9x4xf32, #tpu.memory_space<vmem>>, vector<1x8x8x4xf32>
    %28 = vector.shape_cast %27 : vector<1x8x8x4xf32> to vector<64x4xf32>
    %29 = arith.truncf %28 : vector<64x4xf32> to vector<64x4xbf16>
    %c4 = arith.constant 4 : index
    %c0_31 = arith.constant 0 : index
    %c0_32 = arith.constant 0 : index
    %30 = vector.load %arg5[%c4, %c0_31, %c0_32] : memref<9x4x8xbf16, #tpu.memory_space<vmem>>, vector<1x4x8xbf16>
    %31 = vector.shape_cast %30 : vector<1x4x8xbf16> to vector<4x8xbf16>
    %cst_33 = arith.constant dense<0.000000e+00> : vector<64x8xf32>
    %32 = tpu.matmul %29, %31, %cst_33 {dimension_numbers = #tpu.dot_dimension_numbers<[1], [0], [0], [1], [0, 0, 1, 1], [], []>} : vector<64x4xbf16>, vector<4x8xbf16>, vector<64x8xf32> -> vector<64x8xf32>
    %33 = arith.addf %26, %32 : vector<64x8xf32>
    %c0_34 = arith.constant 0 : index
    %c0_35 = arith.constant 0 : index
    %c1_36 = arith.constant 1 : index
    %c0_37 = arith.constant 0 : index
    %34 = vector.load %arg3[%c0_34, %c0_35, %c1_36, %c0_37] : memref<1x9x9x4xf32, #tpu.memory_space<vmem>>, vector<1x8x8x4xf32>
    %35 = vector.shape_cast %34 : vector<1x8x8x4xf32> to vector<64x4xf32>
    %36 = arith.truncf %35 : vector<64x4xf32> to vector<64x4xbf16>
    %c5 = arith.constant 5 : index
    %c0_38 = arith.constant 0 : index
    %c0_39 = arith.constant 0 : index
    %37 = vector.load %arg5[%c5, %c0_38, %c0_39] : memref<9x4x8xbf16, #tpu.memory_space<vmem>>, vector<1x4x8xbf16>
    %38 = vector.shape_cast %37 : vector<1x4x8xbf16> to vector<4x8xbf16>
    %cst_40 = arith.constant dense<0.000000e+00> : vector<64x8xf32>
    %39 = tpu.matmul %36, %38, %cst_40 {dimension_numbers = #tpu.dot_dimension_numbers<[1], [0], [0], [1], [0, 0, 1, 1], [], []>} : vector<64x4xbf16>, vector<4x8xbf16>, vector<64x8xf32> -> vector<64x8xf32>
    %40 = arith.addf %33, %39 : vector<64x8xf32>
    %c0_41 = arith.constant 0 : index
    %c1_42 = arith.constant 1 : index
    %c0_43 = arith.constant 0 : index
    %c0_44 = arith.constant 0 : index
    %41 = vector.load %arg1[%c0_41, %c1_42, %c0_43, %c0_44] : memref<1x9x9x4xf32, #tpu.memory_space<vmem>>, vector<1x8x8x4xf32>
    %42 = vector.shape_cast %41 : vector<1x8x8x4xf32> to vector<64x4xf32>
    %43 = arith.truncf %42 : vector<64x4xf32> to vector<64x4xbf16>
    %c6 = arith.constant 6 : index
    %c0_45 = arith.constant 0 : index
    %c0_46 = arith.constant 0 : index
    %44 = vector.load %arg5[%c6, %c0_45, %c0_46] : memref<9x4x8xbf16, #tpu.memory_space<vmem>>, vector<1x4x8xbf16>
    %45 = vector.shape_cast %44 : vector<1x4x8xbf16> to vector<4x8xbf16>
    %cst_47 = arith.constant dense<0.000000e+00> : vector<64x8xf32>
    %46 = tpu.matmul %43, %45, %cst_47 {dimension_numbers = #tpu.dot_dimension_numbers<[1], [0], [0], [1], [0, 0, 1, 1], [], []>} : vector<64x4xbf16>, vector<4x8xbf16>, vector<64x8xf32> -> vector<64x8xf32>
    %47 = arith.addf %40, %46 : vector<64x8xf32>
    %c0_48 = arith.constant 0 : index
    %c1_49 = arith.constant 1 : index
    %c0_50 = arith.constant 0 : index
    %c0_51 = arith.constant 0 : index
    %48 = vector.load %arg2[%c0_48, %c1_49, %c0_50, %c0_51] : memref<1x9x9x4xf32, #tpu.memory_space<vmem>>, vector<1x8x8x4xf32>
    %49 = vector.shape_cast %48 : vector<1x8x8x4xf32> to vector<64x4xf32>
    %50 = arith.truncf %49 : vector<64x4xf32> to vector<64x4xbf16>
    %c7 = arith.constant 7 : index
    %c0_52 = arith.constant 0 : index
    %c0_53 = arith.constant 0 : index
    %51 = vector.load %arg5[%c7, %c0_52, %c0_53] : memref<9x4x8xbf16, #tpu.memory_space<vmem>>, vector<1x4x8xbf16>
    %52 = vector.shape_cast %51 : vector<1x4x8xbf16> to vector<4x8xbf16>
    %cst_54 = arith.constant dense<0.000000e+00> : vector<64x8xf32>
    %53 = tpu.matmul %50, %52, %cst_54 {dimension_numbers = #tpu.dot_dimension_numbers<[1], [0], [0], [1], [0, 0, 1, 1], [], []>} : vector<64x4xbf16>, vector<4x8xbf16>, vector<64x8xf32> -> vector<64x8xf32>
    %54 = arith.addf %47, %53 : vector<64x8xf32>
    %c0_55 = arith.constant 0 : index
    %c1_56 = arith.constant 1 : index
    %c1_57 = arith.constant 1 : index
    %c0_58 = arith.constant 0 : index
    %55 = vector.load %arg1[%c0_55, %c1_56, %c1_57, %c0_58] : memref<1x9x9x4xf32, #tpu.memory_space<vmem>>, vector<1x8x8x4xf32>
    %56 = vector.shape_cast %55 : vector<1x8x8x4xf32> to vector<64x4xf32>
    %57 = arith.truncf %56 : vector<64x4xf32> to vector<64x4xbf16>
    %c8 = arith.constant 8 : index
    %c0_59 = arith.constant 0 : index
    %c0_60 = arith.constant 0 : index
    %58 = vector.load %arg5[%c8, %c0_59, %c0_60] : memref<9x4x8xbf16, #tpu.memory_space<vmem>>, vector<1x4x8xbf16>
    %59 = vector.shape_cast %58 : vector<1x4x8xbf16> to vector<4x8xbf16>
    %cst_61 = arith.constant dense<0.000000e+00> : vector<64x8xf32>
    %60 = tpu.matmul %57, %59, %cst_61 {dimension_numbers = #tpu.dot_dimension_numbers<[1], [0], [0], [1], [0, 0, 1, 1], [], []>} : vector<64x4xbf16>, vector<4x8xbf16>, vector<64x8xf32> -> vector<64x8xf32>
    %61 = arith.addf %54, %60 : vector<64x8xf32>
    %62 = vector.shape_cast %61 : vector<64x8xf32> to vector<1x8x8x8xf32>
    %63 = arith.truncf %62 : vector<1x8x8x8xf32> to vector<1x8x8x8xbf16>
    %c0_62 = arith.constant 0 : index
    %c0_63 = arith.constant 0 : index
    %c0_64 = arith.constant 0 : index
    %c0_65 = arith.constant 0 : index
    %64 = vector.load %arg7[%c0_62, %c0_63, %c0_64, %c0_65] : memref<1x8x8x8xbf16, #tpu.memory_space<vmem>>, vector<1x8x8x8xbf16>
    tpu.vector_store %arg7[%c0_62, %c0_63, %c0_64, %c0_65], %63 {strides = array<i32>} : memref<1x8x8x8xbf16, #tpu.memory_space<vmem>>, vector<1x8x8x8xbf16>,
    %cst_66 = arith.constant dense<0.000000e+00> : vector<8xf32>
    %65 = vector.multi_reduction <add>, %61, %cst_66 [0] : vector<64x8xf32> to vector<8xf32>
    %66 = vector.shape_cast %65 : vector<8xf32> to vector<1x8xf32>
    %67 = vector.shape_cast %66 : vector<1x8xf32> to vector<1x1x8xf32>
    %c0_67 = arith.constant 0 : index
    %c0_68 = arith.constant 0 : index
    %c0_69 = arith.constant 0 : index
    %68 = vector.load %arg8[%c0_67, %c0_68, %c0_69] : memref<1x2x8xf32, #tpu.memory_space<vmem>>, vector<1x1x8xf32>
    tpu.vector_store %arg8[%c0_67, %c0_68, %c0_69], %67 {strides = array<i32>} : memref<1x2x8xf32, #tpu.memory_space<vmem>>, vector<1x1x8xf32>,
    %69 = arith.mulf %61, %61 : vector<64x8xf32>
    %cst_70 = arith.constant dense<0.000000e+00> : vector<8xf32>
    %70 = vector.multi_reduction <add>, %69, %cst_70 [0] : vector<64x8xf32> to vector<8xf32>
    %71 = vector.shape_cast %70 : vector<8xf32> to vector<1x8xf32>
    %72 = vector.shape_cast %71 : vector<1x8xf32> to vector<1x1x8xf32>
    %c0_71 = arith.constant 0 : index
    %c1_72 = arith.constant 1 : index
    %c0_73 = arith.constant 0 : index
    %73 = vector.load %arg8[%c0_71, %c1_72, %c0_73] : memref<1x2x8xf32, #tpu.memory_space<vmem>>, vector<1x1x8xf32>
    tpu.vector_store %arg8[%c0_71, %c1_72, %c0_73], %72 {strides = array<i32>} : memref<1x2x8xf32, #tpu.memory_space<vmem>>, vector<1x1x8xf32>,
    %c0_74 = arith.constant 0 : index
    %c0_75 = arith.constant 0 : index
    %c0_76 = arith.constant 0 : index
    %c0_77 = arith.constant 0 : index
    %74 = vector.load %arg4[%c0_74, %c0_75, %c0_76, %c0_77] : memref<1x9x9x4xf32, #tpu.memory_space<vmem>>, vector<1x8x8x4xf32>
    %75 = vector.shape_cast %74 : vector<1x8x8x4xf32> to vector<64x4xf32>
    %76 = arith.truncf %75 : vector<64x4xf32> to vector<64x4xbf16>
    %c0_78 = arith.constant 0 : index
    %c0_79 = arith.constant 0 : index
    %77 = vector.load %arg6[%c0_78, %c0_79] : memref<4x8xbf16, #tpu.memory_space<vmem>>, vector<4x8xbf16>
    %cst_80 = arith.constant dense<0.000000e+00> : vector<64x8xf32>
    %78 = tpu.matmul %76, %77, %cst_80 {dimension_numbers = #tpu.dot_dimension_numbers<[1], [0], [0], [1], [0, 0, 1, 1], [], []>} : vector<64x4xbf16>, vector<4x8xbf16>, vector<64x8xf32> -> vector<64x8xf32>
    %79 = vector.shape_cast %78 : vector<64x8xf32> to vector<1x8x8x8xf32>
    %80 = arith.truncf %79 : vector<1x8x8x8xf32> to vector<1x8x8x8xbf16>
    %c0_81 = arith.constant 0 : index
    %c0_82 = arith.constant 0 : index
    %c0_83 = arith.constant 0 : index
    %c0_84 = arith.constant 0 : index
    %81 = vector.load %arg9[%c0_81, %c0_82, %c0_83, %c0_84] : memref<1x8x8x8xbf16, #tpu.memory_space<vmem>>, vector<1x8x8x8xbf16>
    tpu.vector_store %arg9[%c0_81, %c0_82, %c0_83, %c0_84], %80 {strides = array<i32>} : memref<1x8x8x8xbf16, #tpu.memory_space<vmem>>, vector<1x8x8x8xbf16>,
    %cst_85 = arith.constant dense<0.000000e+00> : vector<8xf32>
    %82 = vector.multi_reduction <add>, %78, %cst_85 [0] : vector<64x8xf32> to vector<8xf32>
    %83 = vector.shape_cast %82 : vector<8xf32> to vector<1x8xf32>
    %84 = vector.shape_cast %83 : vector<1x8xf32> to vector<1x1x8xf32>
    %c0_86 = arith.constant 0 : index
    %c0_87 = arith.constant 0 : index
    %c0_88 = arith.constant 0 : index
    %85 = vector.load %arg10[%c0_86, %c0_87, %c0_88] : memref<1x2x8xf32, #tpu.memory_space<vmem>>, vector<1x1x8xf32>
    tpu.vector_store %arg10[%c0_86, %c0_87, %c0_88], %84 {strides = array<i32>} : memref<1x2x8xf32, #tpu.memory_space<vmem>>, vector<1x1x8xf32>,
    %86 = arith.mulf %78, %78 : vector<64x8xf32>
    %cst_89 = arith.constant dense<0.000000e+00> : vector<8xf32>
    %87 = vector.multi_reduction <add>, %86, %cst_89 [0] : vector<64x8xf32> to vector<8xf32>
    %88 = vector.shape_cast %87 : vector<8xf32> to vector<1x8xf32>
    %89 = vector.shape_cast %88 : vector<1x8xf32> to vector<1x1x8xf32>
    %c0_90 = arith.constant 0 : index
    %c1_91 = arith.constant 1 : index
    %c0_92 = arith.constant 0 : index
    %90 = vector.load %arg10[%c0_90, %c1_91, %c0_92] : memref<1x2x8xf32, #tpu.memory_space<vmem>>, vector<1x1x8xf32>
    tpu.vector_store %arg10[%c0_90, %c1_91, %c0_92], %89 {strides = array<i32>} : memref<1x2x8xf32, #tpu.memory_space<vmem>>, vector<1x1x8xf32>,
    return
  }
  func.func @transform_0(%arg0: i32) -> (i32, i32, i32, i32) {
    %c0_i32 = arith.constant 0 : i32
    %c0_i32_0 = arith.constant 0 : i32
    %c0_i32_1 = arith.constant 0 : i32
    %c0_i32_2 = arith.constant 0 : i32
    return %arg0, %c0_i32, %c0_i32_0, %c0_i32_1 : i32, i32, i32, i32
  }
  func.func @transform_1(%arg0: i32) -> (i32, i32, i32, i32) {
    %c0_i32 = arith.constant 0 : i32
    %c0_i32_0 = arith.constant 0 : i32
    %c0_i32_1 = arith.constant 0 : i32
    %c0_i32_2 = arith.constant 0 : i32
    return %arg0, %c0_i32, %c0_i32_0, %c0_i32_1 : i32, i32, i32, i32
  }
  func.func @transform_2(%arg0: i32) -> (i32, i32, i32, i32) {
    %c0_i32 = arith.constant 0 : i32
    %c0_i32_0 = arith.constant 0 : i32
    %c0_i32_1 = arith.constant 0 : i32
    %c0_i32_2 = arith.constant 0 : i32
    return %arg0, %c0_i32, %c0_i32_0, %c0_i32_1 : i32, i32, i32, i32
  }
  func.func @transform_3(%arg0: i32) -> (i32, i32, i32, i32) {
    %c0_i32 = arith.constant 0 : i32
    %c0_i32_0 = arith.constant 0 : i32
    %c0_i32_1 = arith.constant 0 : i32
    %c0_i32_2 = arith.constant 0 : i32
    return %arg0, %c0_i32, %c0_i32_0, %c0_i32_1 : i32, i32, i32, i32
  }
  func.func @transform_4(%arg0: i32) -> (i32, i32, i32) {
    %c0_i32 = arith.constant 0 : i32
    %c0_i32_0 = arith.constant 0 : i32
    %c0_i32_1 = arith.constant 0 : i32
    %c0_i32_2 = arith.constant 0 : i32
    return %c0_i32, %c0_i32_0, %c0_i32_1 : i32, i32, i32
  }
  func.func @transform_5(%arg0: i32) -> (i32, i32) {
    %c0_i32 = arith.constant 0 : i32
    %c0_i32_0 = arith.constant 0 : i32
    %c0_i32_1 = arith.constant 0 : i32
    return %c0_i32, %c0_i32_0 : i32, i32
  }
  func.func @transform_6(%arg0: i32) -> (i32, i32, i32, i32) {
    %c0_i32 = arith.constant 0 : i32
    %c0_i32_0 = arith.constant 0 : i32
    %c0_i32_1 = arith.constant 0 : i32
    %c0_i32_2 = arith.constant 0 : i32
    return %arg0, %c0_i32, %c0_i32_0, %c0_i32_1 : i32, i32, i32, i32
  }
  func.func @transform_7(%arg0: i32) -> (i32, i32, i32) {
    %c0_i32 = arith.constant 0 : i32
    %c0_i32_0 = arith.constant 0 : i32
    %c0_i32_1 = arith.constant 0 : i32
    return %arg0, %c0_i32, %c0_i32_0 : i32, i32, i32
  }
  func.func @transform_8(%arg0: i32) -> (i32, i32, i32, i32) {
    %c0_i32 = arith.constant 0 : i32
    %c0_i32_0 = arith.constant 0 : i32
    %c0_i32_1 = arith.constant 0 : i32
    %c0_i32_2 = arith.constant 0 : i32
    return %arg0, %c0_i32, %c0_i32_0, %c0_i32_1 : i32, i32, i32, i32
  }
  func.func @transform_9(%arg0: i32) -> (i32, i32, i32) {
    %c0_i32 = arith.constant 0 : i32
    %c0_i32_0 = arith.constant 0 : i32
    %c0_i32_1 = arith.constant 0 : i32
    return %arg0, %c0_i32, %c0_i32_0 : i32, i32, i32
  }
}

</mosaic_0001>

<bundles_post_ra>
// kernel: resblock_forward.5
= control target key start
LH: loop header
LB: loop body
LE: loop exit
PB: predicated region body
PF: predicated region fallthrough
CT: control target
= control target key end

     0   :  { %s553_s21 = smov 0   ;;  %s659_s0 = inlined_call_operand.vmem [shape: bf16[2,8,8,8], index: 0, kind: input, shape index: {}]   ;;  %s660_s1 = inlined_call_operand.vmem [shape: f32[1,8], index: 1, kind: input, shape index: {}]   ;;  %s661_s2 = inlined_call_operand.vmem [shape: f32[1,8], index: 2, kind: input, shape index: {}]   ;;  %s662_s3 = inlined_call_operand.vmem [shape: bf16[2,8,8,8], index: 3, kind: input, shape index: {}]   ;;  %s663_s4 = inlined_call_operand.vmem [shape: f32[1,8], index: 4, kind: input, shape index: {}]   ;;  %s664_s5 = inlined_call_operand.vmem [shape: f32[1,8], index: 5, kind: input, shape index: {}]   ;;  %s665_s6 = inlined_call_operand.vmem [shape: f32[2,8,8,8], index: 6, kind: output, shape index: {}]  }
   0x1 LB: > { %s444_s22 = sadd.s32 4294967295, %s516_s21   ;;  %p448_p0 = scmp.ge.s32.totalorder %s516_s21, 1  ;;  %s516_s21 = sphi %s553_s21, %s16_s21  }
   0x2   : > { %p222_p1 = scmp.lt.s32.totalorder %s516_s21, 3 }
   0x4   : > { %p223_p2 = pnand %p448_p0, %p222_p1 }
   0x5   : > { %p257_p3 = scmp.lt.s32.totalorder (!%p223_p2), %s444_s22, 1 }
   0x6   : > { %226 = sbr.rel (%p223_p2) target bundleno = 37 (0x25), region = 44 }
   0xb   : > { %s667_s22 = smov (!%p257_p3, %s444_s22), 1  ;;  %v577_v0 = vld [vmem:[%s660_s1] ss:$0 sm:$0xff]  ;;  %vm368_vm0 = vcmask 64512  }
   0xc   : > { %s457_s23 = sshll.u32 %s667_s22, 5  ;;  %v582_v1 = vld [vmem:[%s663_s4] ss:$0 sm:$0xff]  ;;  %s459_s14 = sshll.u32 %s667_s22, 6 }
   0xd   : > { %s567_s26 = scalar_lea.vmem %s659_s0, %s457_s23  ;;  %s572_s29 = scalar_lea.vmem %s662_s3, %s457_s23  ;;  %v590_v6 = vld [vmem:[%s661_s2] ss:$0 sm:$0xff] }
   0xe   : > { %v461_v2 = vld [vmem:[%s567_s26] sm:$0xff]   ;;  %v492_v4 = vld [vmem:[%s567_s26 + $0x8] sm:$0xff]   ;;  %v493_v24 = vld [vmem:[%s567_s26 + $0x10] sm:$0xff]   ;;  %s620_s17 = scalar_lea.vmem %s665_s6, %s459_s14 }
   0xf   : > { %v477_v3 = vld [vmem:[%s572_s29] sm:$0xff]   ;;  %v462_v5 = vunpack.c.l.bf16 %v461_v2  ;;  %v463_v9 = vunpack.c.h.bf16 %v461_v2  ;;  %v495_v11 = vld [vmem:[%s572_s29 + $0x8] sm:$0xff]   ;;  %v466_v12 = vunpack.c.l.bf16 %v492_v4  ;;  %v467_v14 = vunpack.c.h.bf16 %v492_v4  ;;  %v496_v25 = vld [vmem:[%s572_s29 + $0x10] sm:$0xff]  }
  0x10   : > { %v478_v7 = vunpack.c.l.bf16 %v477_v3  ;;  %v595_v8 = vld [vmem:[%s664_s5] ss:$0 sm:$0xff]  ;;  %v479_v10 = vunpack.c.h.bf16 %v477_v3  ;;  %v482_v13 = vunpack.c.l.bf16 %v495_v11  ;;  %v483_v15 = vunpack.c.h.bf16 %v495_v11  ;;  %v494_v42 = vld [vmem:[%s567_s26 + $0x18] sm:$0xff]  }
  0x11   : > { %v292_v16 = vmul.f32 %v577_v0, %v462_v5  ;;  %v293_v18 = vmul.f32 %v577_v0, %v463_v9  ;;  %v294_v20 = vmul.f32 %v577_v0, %v466_v12  ;;  %v295_v22 = vmul.f32 %v577_v0, %v467_v14  ;;  %v497_v43 = vld [vmem:[%s572_s29 + $0x18] sm:$0xff]  }
  0x12   : > { %v332_v17 = vmul.f32 %v582_v1, %v478_v7  ;;  %v333_v19 = vmul.f32 %v582_v1, %v479_v10  ;;  %v334_v21 = vmul.f32 %v582_v1, %v482_v13  ;;  %v335_v23 = vmul.f32 %v582_v1, %v483_v15 }
  0x13   : > { %v304_v26 = vadd.f32 %v590_v6, %v292_v16  ;;  %v305_v28 = vadd.f32 %v590_v6, %v293_v18  ;;  %v306_v30 = vadd.f32 %v590_v6, %v294_v20  ;;  %v307_v32 = vadd.f32 %v590_v6, %v295_v22 }
  0x14   : > { %v344_v27 = vadd.f32 %v595_v8, %v332_v17  ;;  %v345_v29 = vadd.f32 %v595_v8, %v333_v19  ;;  %v346_v31 = vadd.f32 %v595_v8, %v334_v21  ;;  %v347_v33 = vadd.f32 %v595_v8, %v335_v23 }
  0x15   : > { %v470_v36 = vunpack.c.l.bf16 %v493_v24  ;;  %v486_v37 = vunpack.c.l.bf16 %v496_v25  ;;  %v471_v40 = vunpack.c.h.bf16 %v493_v24  ;;  %v487_v41 = vunpack.c.h.bf16 %v496_v25 }
  0x16   : > { %v352_v34 = vadd.f32 %v344_v27, %v304_v26  ;;  %v353_v35 = vadd.f32 %v345_v29, %v305_v28  ;;  %v354_v38 = vadd.f32 %v346_v31, %v306_v30  ;;  %v355_v39 = vadd.f32 %v347_v33, %v307_v32 }
  0x17   : > { %v296_v46 = vmul.f32 %v577_v0, %v470_v36  ;;  %v336_v47 = vmul.f32 %v582_v1, %v486_v37  ;;  %v297_v50 = vmul.f32 %v577_v0, %v471_v40  ;;  %v337_v51 = vmul.f32 %v582_v1, %v487_v41 }
  0x18   : > { %v360_v44 = vmax.f32 %v352_v34, 0.0  ;;  %v361_v45 = vmax.f32 %v353_v35, 0.0  ;;  %v362_v48 = vmax.f32 %v354_v38, 0.0  ;;  %v363_v49 = vmax.f32 %v355_v39, 0.0 }
  0x19   : > { %v308_v52 = vadd.f32 %v590_v6, %v296_v46  ;;  %v348_v53 = vadd.f32 %v595_v8, %v336_v47  ;;  %v474_v54 = vunpack.c.l.bf16 %v494_v42  ;;  %v490_v55 = vunpack.c.l.bf16 %v497_v43 }
  0x1a   : > { %369 = vst.msk [vmem:[%s620_s17] sm:$0xff] %vm368_vm0, %v360_v44  ;;  %v309_v56 = vadd.f32 %v590_v6, %v297_v50  ;;  %v349_v57 = vadd.f32 %v595_v8, %v337_v51  ;;  %v475_v58 = vunpack.c.h.bf16 %v494_v42  ;;  %v491_v59 = vunpack.c.h.bf16 %v497_v43 }
  0x1b   : > { %370 = vst.msk [vmem:[%s620_s17 + $0x8] sm:$0xff] %vm368_vm0, %v361_v45  ;;  %v356_v60 = vadd.f32 %v348_v53, %v308_v52  ;;  %v298_v61 = vmul.f32 %v577_v0, %v474_v54  ;;  %v338_v62 = vmul.f32 %v582_v1, %v490_v55 }
  0x1c   : > { %371 = vst.msk [vmem:[%s620_s17 + $0x10] sm:$0xff] %vm368_vm0, %v362_v48  ;;  %v357_v63 = vadd.f32 %v349_v57, %v309_v56  ;;  %v299_v2 = vmul.f32 %v577_v0, %v475_v58  ;;  %v339_v3 = vmul.f32 %v582_v1, %v491_v59 }
  0x1d   : > { %372 = vst.msk [vmem:[%s620_s17 + $0x18] sm:$0xff] %vm368_vm0, %v363_v49  ;;  %v364_v4 = vmax.f32 %v356_v60, 0.0  ;;  %v310_v5 = vadd.f32 %v590_v6, %v298_v61  ;;  %v350_v7 = vadd.f32 %v595_v8, %v338_v62 }
  0x1e   : > { %v365_v9 = vmax.f32 %v357_v63, 0.0  ;;  %v311_v10 = vadd.f32 %v590_v6, %v299_v2  ;;  %v351_v11 = vadd.f32 %v595_v8, %v339_v3 }
  0x1f   : > { %373 = vst.msk [vmem:[%s620_s17 + $0x20] sm:$0xff] %vm368_vm0, %v364_v4  ;;  %v358_v12 = vadd.f32 %v350_v7, %v310_v5 }
  0x20   : > { %374 = vst.msk [vmem:[%s620_s17 + $0x28] sm:$0xff] %vm368_vm0, %v365_v9  ;;  %v359_v13 = vadd.f32 %v351_v11, %v311_v10 }
  0x21   : > { %v366_v14 = vmax.f32 %v358_v12, 0.0 }
  0x22   : > { %v367_v0 = vmax.f32 %v359_v13, 0.0 }
  0x23   : > { %375 = vst.msk [vmem:[%s620_s17 + $0x30] sm:$0xff] %vm368_vm0, %v366_v14 }
  0x24   : > { %376 = vst.msk [vmem:[%s620_s17 + $0x38] sm:$0xff] %vm368_vm0, %v367_v0 }
  0x25 PF: > { %s16_s21 = sadd.s32 1, %s516_s21  }
  0x26   : > { %p13_p4 = scmp.ge.s32.totalorder %s16_s21, 4  }
  0x28   :  { %15 = sbr.rel (!%p13_p4) target bundleno = 1 (0x1), region = 77 }

// kernel: resblock_forward.4
= control target key start
LH: loop header
LB: loop body
LE: loop exit
PB: predicated region body
PF: predicated region fallthrough
CT: control target
= control target key end

     0   :  { %s1253_s18 = smov 0   ;;  %s1610_s0 = inlined_call_operand.vmem [shape: bf16[2,8,8,8], index: 0, kind: input, shape index: {}]   ;;  %s1611_s1 = inlined_call_operand.vmem [shape: f32[1,8], index: 1, kind: input, shape index: {}]   ;;  %s1612_s2 = inlined_call_operand.vmem [shape: f32[1,8], index: 2, kind: input, shape index: {}]   ;;  %s1613_s3 = inlined_call_operand.vmem [shape: bf16[9,8,8], index: 3, kind: input, shape index: {}]   ;;  %s1614_s4 = inlined_call_operand.vmem [shape: bf16[2,8,8,8], index: 4, kind: output, shape index: {0}]   ;;  %s1615_s5 = inlined_call_operand.vmem [shape: f32[2,2,8], index: 5, kind: output, shape index: {1}]  }
   0x1 LB: > { %s1123_s19 = sadd.s32 4294967295, %s1220_s18   ;;  %p1127_p0 = scmp.ge.s32.totalorder %s1220_s18, 1  ;;  %s1220_s18 = sphi %s1253_s18, %s16_s18  }
   0x2   : > { %p190_p1 = scmp.lt.s32.totalorder %s1220_s18, 3 }
   0x4   : > { %p191_p2 = pnand %p1127_p0, %p190_p1 }
   0x5   : > { %p222_p3 = scmp.lt.s32.totalorder (!%p191_p2), %s1123_s19, 1 }
   0x6   : > { %194 = sbr.rel (%p191_p2) target bundleno = 341 (0x155), region = 36 }
   0xb   : > { %v1133_v0 = vld [vmem:[%s1613_s3 + $0x4] sm:$0xf]  ;;  %vm423_vm0 = vcmask 1043456   ;;  %s1617_s19 = smov (!%p222_p3, %s1123_s19), 1  ;;  %vm285_vm1 = vcmask 64512   ;;  %vm287_vm2 = vcmask 58368  }
   0xc   : > { %v425_v1 = vsel %vm423_vm0, %v1133_v0, 0  ;;  %v1222_v2 = vmov 0.0   ;;  %vm292_vm3 = vcmask 57344   ;;  %s1179_s22 = sshll.u32 %s1617_s19, 5  ;;  %v1280_v3 = vld [vmem:[%s1611_s1] ss:$0 sm:$0xff] }
   0xd   : > { %1200 = vmatpush.bf16.msra.mxu1 %v425_v1  ;;  %1201 = vmatpush.bf16.msra.mxu2 %v425_v1  ;;  %286 = vst.msk [vmem:[#allocation2] sm:$0xff] %vm285_vm1, %v1222_v2  ;;  %s226_s25 = scalar_lea.vmem %s1610_s0, %s1179_s22  ;;  %v1285_v4 = vld [vmem:[%s1612_s2] ss:$0 sm:$0xff]  ;;  %v1142_v13 = vld [vmem:[%s1613_s3 + $0x8] sm:$0xf]  ;;  %s1545_s26 = scalar_lea.vmem %s1614_s4, %s1179_s22  ;;  %vm976_vm4 = vcmask 60416  }
   0xe   : > { %1202 = vmatpush.bf16.msra.mxu3 %v425_v1  ;;  %434 = vmatpush.bf16.msra.mxu0 %v425_v1  ;;  %288 = vst.msk [vmem:[#allocation2 + $0x8] sm:$0x3] %vm287_vm2, %v1222_v2  ;;  %v1182_v5 = vld [vmem:[%s226_s25] sm:$0xff]   ;;  %v1197_v6 = vld [vmem:[%s226_s25 + $0x8] sm:$0xff]   ;;  %v1198_v7 = vld [vmem:[%s226_s25 + $0x10] sm:$0xff]   ;;  %v527_v16 = vsel %vm423_vm0, %v1142_v13, 0 }
   0xf   : > { %303 = vst.msk [vmem:[#allocation2 + $0x9] sm:$0x1] %vm292_vm3, %v1222_v2  ;;  %v1184_v8 = vunpack.c.h.bf16 %v1182_v5  ;;  %v1187_v9 = vunpack.c.l.bf16 %v1197_v6  ;;  %v1188_v10 = vunpack.c.h.bf16 %v1197_v6  ;;  %v1191_v11 = vunpack.c.l.bf16 %v1198_v7  ;;  %v1291_v12 = vld [vmem:[%s226_s25 + $0x18] sm:$0xff]   ;;  %v1147_v18 = vld [vmem:[%s1613_s3 + $0xc] sm:$0xf]  ;;  %s1132_s22 = sshll.u32 %s1617_s19, 1 }
  0x10   : > { %290 = vst.msk [vmem:[#allocation2 + $0x90] sm:$0xff] %vm285_vm1, %v1222_v2  ;;  %v1192_v14 = vunpack.c.h.bf16 %v1198_v7  ;;  %v1195_v15 = vunpack.c.l.bf16 %v1291_v12  ;;  %v1183_v17 = vunpack.c.l.bf16 %v1182_v5  ;;  %v594_v26 = vsel %vm423_vm0, %v1147_v18, 0  ;;  %v396_v27 = vld [vmem:[%s1613_s3] sm:$0xf]  ;;  %v1152_v33 = vld [vmem:[%s1613_s3 + $0x10] sm:$0xf]  ;;  %s235_s29 = scalar_lea.vmem %s1615_s5, %s1132_s22 }
  0x11   : > { %291 = vst.msk [vmem:[#allocation2 + $0x98] sm:$0x3] %vm287_vm2, %v1222_v2  ;;  %v258_v19 = vmul.f32 %v1280_v3, %v1184_v8  ;;  %v259_v20 = vmul.f32 %v1280_v3, %v1187_v9  ;;  %v260_v21 = vmul.f32 %v1280_v3, %v1188_v10  ;;  %v261_v22 = vmul.f32 %v1280_v3, %v1191_v11  ;;  %v1157_v53 = vld [vmem:[%s1613_s3 + $0x14] sm:$0xf]  ;;  %v1162_v56 = vld [vmem:[%s1613_s3 + $0x18] sm:$0xf] }
  0x12   : > { %293 = vst.msk [vmem:[#allocation2] sm:$0x1] %vm292_vm3, %v1222_v2  ;;  %536 = vmatpush.bf16.msrb.mxu2 %v527_v16  ;;  %v262_v23 = vmul.f32 %v1280_v3, %v1192_v14  ;;  %v263_v24 = vmul.f32 %v1280_v3, %v1195_v15  ;;  %v257_v25 = vmul.f32 %v1280_v3, %v1183_v17  ;;  %v469_v36 = vsel %vm423_vm0, %v396_v27, 0  ;;  %v1167_v62 = vld [vmem:[%s1613_s3 + $0x1c] sm:$0xf] }
  0x13   : > { %294 = vst.msk [vmem:[#allocation2 + $0x10] sm:$0x1] %vm292_vm3, %v1222_v2  ;;  %v270_v28 = vadd.f32 %v1285_v4, %v258_v19  ;;  %v271_v29 = vadd.f32 %v1285_v4, %v259_v20  ;;  %v272_v30 = vadd.f32 %v1285_v4, %v260_v21  ;;  %v273_v31 = vadd.f32 %v1285_v4, %v261_v22  ;;  %v1172_v5 = vld [vmem:[%s1613_s3 + $0x20] sm:$0xf] }
  0x14   : > { %295 = vst.msk [vmem:[#allocation2 + $0x20] sm:$0x1] %vm292_vm3, %v1222_v2  ;;  %v274_v34 = vadd.f32 %v1285_v4, %v262_v23  ;;  %v275_v35 = vadd.f32 %v1285_v4, %v263_v24  ;;  %603 = vmatpush.bf16.msrb.mxu3 %v594_v26  ;;  %v269_v40 = vadd.f32 %v1285_v4, %v257_v25  ;;  %v661_v42 = vsel %vm423_vm0, %v1152_v33, 0 }
  0x15   : > { %v342_v32 = vld [vmem:[#allocation2 + $0x1] sm:$0xff]  ;;  %v278_v37 = vmax.f32 %v270_v28, 0.0  ;;  %v279_v38 = vmax.f32 %v271_v29, 0.0  ;;  %v280_v39 = vmax.f32 %v272_v30, 0.0  ;;  %296 = vst.msk [vmem:[#allocation2 + $0x30] sm:$0x1] %vm292_vm3, %v1222_v2  ;;  %478 = vmatpush.bf16.msrb.mxu1 %v469_v36  ;;  %670 = vmatpush.bf16.msrb.mxu0 %v661_v42  ;;  %v1196_v21 = vunpack.c.h.bf16 %v1291_v12 }
  0x16   : > { %353 = vst.msk [vmem:[#allocation3 + $0x50] sm:$0xff] %vm285_vm1, %v342_v32  ;;  %v281_v41 = vmax.f32 %v273_v31, 0.0  ;;  %v282_v43 = vmax.f32 %v274_v34, 0.0  ;;  %v283_v44 = vmax.f32 %v275_v35, 0.0  ;;  %v277_v45 = vmax.f32 %v269_v40, 0.0  ;;  %v363_v15 = vld [vmem:[#allocation2 + $0x2] sm:$0xff] }
  0x17   : > { %297 = vst.msk [vmem:[#allocation2 + $0x40] sm:$0x1] %vm292_vm3, %v1222_v2  ;;  %v728_v59 = vsel %vm423_vm0, %v1157_v53, 0  ;;  %v795_v1 = vsel %vm423_vm0, %v1162_v56, 0  ;;  %v862_v9 = vsel %vm423_vm0, %v1167_v62, 0  ;;  %v929_v11 = vsel %vm423_vm0, %v1172_v5, 0 }
  0x18   : > { %315 = vst.msk [vmem:[#allocation2 + $0x21] sm:$0xff] %vm285_vm1, %v278_v37  ;;  %v264_v23 = vmul.f32 %v1280_v3, %v1196_v21 }
  0x19   : > { %316 = vst.msk [vmem:[#allocation2 + $0x31] sm:$0xff] %vm285_vm1, %v279_v38  ;;  %v322_v13 = vld [vmem:[#allocation2] sm:$0xff] }
  0x1a   : > { %317 = vst.msk [vmem:[#allocation2 + $0x41] sm:$0xff] %vm285_vm1, %v280_v39  ;;  %v276_v12 = vadd.f32 %v1285_v4, %v264_v23 }
  0x1b   : > { %318 = vst.msk [vmem:[#allocation2 + $0x51] sm:$0xff] %vm285_vm1, %v281_v41 }
  0x1c   : > { %319 = vst.msk [vmem:[#allocation2 + $0x61] sm:$0xff] %vm285_vm1, %v282_v43  ;;  %v284_v3 = vmax.f32 %v276_v12, 0.0 }
  0x1d   : > { %320 = vst.msk [vmem:[#allocation2 + $0x71] sm:$0xff] %vm285_vm1, %v283_v44  ;;  %v397_v61 = vld [vmem:[#allocation3 + $0x50] sm:$0xff] }
  0x1e   : > { %314 = vst.msk [vmem:[#allocation2 + $0x11] sm:$0xff] %vm285_vm1, %v277_v45 }
  0x1f   : > { %v344_v46 = vld [vmem:[#allocation2 + $0x21] sm:$0xff]  ;;  %298 = vst.msk [vmem:[#allocation2 + $0x50] sm:$0x1] %vm292_vm3, %v1222_v2 }
  0x20   : > { %v345_v47 = vld [vmem:[#allocation2 + $0x31] sm:$0xff]  ;;  %355 = vst.msk [vmem:[#allocation3 + $0x60] sm:$0xff] %vm285_vm1, %v344_v46  ;;  %v324_v17 = vld [vmem:[#allocation2 + $0x20] sm:$0xff] }
  0x21   : > { %356 = vst.msk [vmem:[#allocation3 + $0x68] sm:$0xff] %vm285_vm1, %v345_v47  ;;  %v346_v48 = vld [vmem:[#allocation2 + $0x41] sm:$0xff]  ;;  %v325_v18 = vld [vmem:[#allocation2 + $0x30] sm:$0xff] }
  0x22   : > { %v347_v49 = vld [vmem:[#allocation2 + $0x51] sm:$0xff]  ;;  %357 = vst.msk [vmem:[#allocation3 + $0x70] sm:$0xff] %vm285_vm1, %v346_v48 }
  0x23   : > { %358 = vst.msk [vmem:[#allocation3 + $0x78] sm:$0xff] %vm285_vm1, %v347_v49  ;;  %v348_v50 = vld [vmem:[#allocation2 + $0x61] sm:$0xff] }
  0x24   : > { %v349_v51 = vld [vmem:[#allocation2 + $0x71] sm:$0xff]  ;;  %359 = vst.msk [vmem:[#allocation3 + $0x80] sm:$0xff] %vm285_vm1, %v348_v50 }
  0x25   : > { %360 = vst.msk [vmem:[#allocation3 + $0x88] sm:$0xff] %vm285_vm1, %v349_v51  ;;  %v343_v52 = vld [vmem:[#allocation2 + $0x11] sm:$0xff] }
  0x26   : > { %354 = vst.msk [vmem:[#allocation3 + $0x58] sm:$0xff] %vm285_vm1, %v343_v52  ;;  %v323_v14 = vld [vmem:[#allocation2 + $0x10] sm:$0xff] }
  0x27   : > { %v1356_v54 = vld [vmem:[#allocation3 + $0x60] sm:$0xff]  ;;  %299 = vst.msk [vmem:[#allocation2 + $0x60] sm:$0x1] %vm292_vm3, %v1222_v2  ;;  %v327_v22 = vld [vmem:[#allocation2 + $0x50] sm:$0xff] }
  0x28   : > { %v1360_v55 = vld [vmem:[#allocation3 + $0x68] sm:$0xff]  ;;  %300 = vst.msk [vmem:[#allocation2 + $0x70] sm:$0x1] %vm292_vm3, %v1222_v2 }
  0x29   : > { %v1369_v57 = vpack.c.bf16 %v1360_v55, %v1356_v54  ;;  %v1371_v58 = vld [vmem:[#allocation3 + $0x70] sm:$0xff]  ;;  %301 = vst.msk [vmem:[#allocation2 + $0x80] sm:$0x1] %vm292_vm3, %v1222_v2 }
  0x2a   : > { %v1376_v60 = vld [vmem:[#allocation3 + $0x78] sm:$0xff]  ;;  %304 = vst.msk [vmem:[#allocation2 + $0x19] sm:$0x1] %vm292_vm3, %v1222_v2  ;;  %v643_v45 = vpack.c.bf16 %v1371_v58, %v1360_v55 }
  0x2b   : > { %1135 = vmatmul.msk.bf16.vlgmr.msra.gmra.mxu1 %vm285_vm1, %v1369_v57  ;;  %v1387_v63 = vpack.c.bf16 %v1376_v60, %v1371_v58  ;;  %v1389_v0 = vld [vmem:[#allocation3 + $0x80] sm:$0xff]  ;;  %305 = vst.msk [vmem:[#allocation2 + $0x29] sm:$0x1] %vm292_vm3, %v1222_v2 }
  0x2c   : > { %v1397_v6 = vld [vmem:[#allocation3 + $0x88] sm:$0xff]  ;;  %306 = vst.msk [vmem:[#allocation2 + $0x39] sm:$0x1] %vm292_vm3, %v1222_v2  ;;  %737 = vmatpush.bf16.msra.mxu1 %v728_v59  ;;  %v644_v53 = vpack.c.bf16 %v1389_v0, %v1376_v60 }
  0x2d   : > { %1136 = vmatmul.msk.bf16.vlgmr.msra.gmra.mxu2 %vm285_vm1, %v1387_v63  ;;  %v1405_v7 = vpack.c.bf16 %v1397_v6, %v1389_v0  ;;  %v398_v8 = vld [vmem:[#allocation3 + $0x58] sm:$0xff]  ;;  %307 = vst.msk [vmem:[#allocation2 + $0x49] sm:$0x1] %vm292_vm3, %v1222_v2 }
  0x2e   : > { %v405_v10 = vpack.c.bf16 %v398_v8, %v397_v61  ;;  %308 = vst.msk [vmem:[#allocation2 + $0x59] sm:$0x1] %vm292_vm3, %v1222_v2  ;;  %804 = vmatpush.bf16.msra.mxu2 %v795_v1  ;;  %v642_v27 = vpack.c.bf16 %v1356_v54, %v398_v8  ;;  %v328_v31 = vld [vmem:[#allocation2 + $0x60] sm:$0xff] }
  0x2f   : > { %1137 = vmatmul.msk.bf16.vlgmr.msra.gmra.mxu3 %vm285_vm1, %v1405_v7  ;;  %309 = vst.msk [vmem:[#allocation2 + $0x69] sm:$0x1] %vm292_vm3, %v1222_v2  ;;  %v329_v4 = vld [vmem:[#allocation2 + $0x70] sm:$0xff] }
  0x30   : > { %1134 = vmatmul.msk.bf16.vlgmr.msra.gmra.mxu0 %vm285_vm1, %v405_v10  ;;  %310 = vst.msk [vmem:[#allocation2 + $0x79] sm:$0x1] %vm292_vm3, %v1222_v2  ;;  %871 = vmatpush.bf16.msra.mxu3 %v862_v9  ;;  %v351_v10 = vld [vmem:[#allocation2 + $0x91] sm:$0xff] }
  0x31   : > { %311 = vst.msk [vmem:[#allocation2 + $0x89] sm:$0x1] %vm292_vm3, %v1222_v2  ;;  %938 = vmatpush.bf16.msra.mxu0 %v929_v11  ;;  %v364_v16 = vld [vmem:[#allocation2 + $0x12] sm:$0xff] }
  0x32   : > { %302 = vst.msk [vmem:[#allocation2 + $0x90] sm:$0x1] %vm292_vm3, %v1222_v2  ;;  %v365_v19 = vld [vmem:[#allocation2 + $0x22] sm:$0xff] }
  0x33   : > { %312 = vst.msk [vmem:[#allocation2 + $0x99] sm:$0x1] %vm292_vm3, %v1222_v2  ;;  %v366_v20 = vld [vmem:[#allocation2 + $0x32] sm:$0xff]  ;;  %v326_v2 = vld [vmem:[#allocation2 + $0x40] sm:$0xff] }
  0x34   : > { %332 = vst.msk [vmem:[#allocation3] sm:$0xff] %vm285_vm1, %v322_v13  ;;  %v367_v25 = vld [vmem:[#allocation2 + $0x42] sm:$0xff] }
  0x35   : > { %333 = vst.msk [vmem:[#allocation3 + $0x8] sm:$0xff] %vm285_vm1, %v323_v14  ;;  %v368_v28 = vld [vmem:[#allocation2 + $0x52] sm:$0xff] }
  0x36   : > { %374 = vst.msk [vmem:[#allocation3 + $0xa0] sm:$0xff] %vm285_vm1, %v363_v15  ;;  %v369_v36 = vld [vmem:[#allocation2 + $0x62] sm:$0xff] }
  0x37   : > { %375 = vst.msk [vmem:[#allocation3 + $0xa8] sm:$0xff] %vm285_vm1, %v364_v16  ;;  %v370_v37 = vld [vmem:[#allocation2 + $0x72] sm:$0xff] }
  0x38   : > { %334 = vst.msk [vmem:[#allocation3 + $0x10] sm:$0xff] %vm285_vm1, %v324_v17 }
  0x39   : > { %335 = vst.msk [vmem:[#allocation3 + $0x18] sm:$0xff] %vm285_vm1, %v325_v18  ;;  %v331_v9 = vld [vmem:[#allocation2 + $0x90] sm:$0xff] }
  0x3a   : > { %376 = vst.msk [vmem:[#allocation3 + $0xb0] sm:$0xff] %vm285_vm1, %v365_v19  ;;  %v372_v11 = vld [vmem:[#allocation2 + $0x92] sm:$0xff] }
  0x3b   : > { %v384_v24 = vld [vmem:[#allocation3] sm:$0xff]  ;;  %377 = vst.msk [vmem:[#allocation3 + $0xb8] sm:$0xff] %vm285_vm1, %v366_v20 }
  0x3c   : > { %v385_v26 = vld [vmem:[#allocation3 + $0x8] sm:$0xff]  ;;  %336 = vst.msk [vmem:[#allocation3 + $0x20] sm:$0xff] %vm285_vm1, %v326_v2 }
  0x3d   : > { %v392_v29 = vpack.c.bf16 %v385_v26, %v384_v24  ;;  %v500_v30 = vld [vmem:[#allocation3 + $0xa0] sm:$0xff]  ;;  %337 = vst.msk [vmem:[#allocation3 + $0x28] sm:$0xff] %vm285_vm1, %v327_v22 }
  0x3e   : > { %v501_v32 = vld [vmem:[#allocation3 + $0xa8] sm:$0xff]  ;;  %378 = vst.msk [vmem:[#allocation3 + $0xc0] sm:$0xff] %vm285_vm1, %v367_v25 }
  0x3f   : > { %1138 = vmatmul.msk.bf16.vlgmr.msrb.gmra.mxu1 %vm285_vm1, %v392_v29  ;;  %v508_v33 = vpack.c.bf16 %v501_v32, %v500_v30  ;;  %v568_v34 = vld [vmem:[#allocation3 + $0x10] sm:$0xff]  ;;  %379 = vst.msk [vmem:[#allocation3 + $0xc8] sm:$0xff] %vm285_vm1, %v368_v28 }
  0x40   : > { %v575_v35 = vpack.c.bf16 %v568_v34, %v385_v26  ;;  %1153 = vmatmul.msk.bf16.vlgmr.msrb.gmra.mxu0 %vm285_vm1, %v642_v27  ;;  %338 = vst.msk [vmem:[#allocation3 + $0x30] sm:$0xff] %vm285_vm1, %v328_v31  ;;  %v387_v38 = vld [vmem:[#allocation3 + $0x18] sm:$0xff] }
  0x41   : > { %1143 = vmatmul.msk.bf16.vlgmr.msrb.gmra.mxu2 %vm285_vm1, %v508_v33  ;;  %321 = vst.msk [vmem:[#allocation2 + $0x81] sm:$0xff] %vm285_vm1, %v284_v3  ;;  %v502_v41 = vld [vmem:[#allocation3 + $0xb0] sm:$0xff]  ;;  %v393_v43 = vpack.c.bf16 %v387_v38, %v568_v34 }
  0x42   : > { %1148 = vmatmul.msk.bf16.vlgmr.msrb.gmra.mxu3 %vm285_vm1, %v575_v35  ;;  %339 = vst.msk [vmem:[#allocation3 + $0x38] sm:$0xff] %vm285_vm1, %v329_v4  ;;  %v503_v42 = vld [vmem:[#allocation3 + $0xb8] sm:$0xff]  ;;  %v709_v0 = vpack.c.bf16 %v502_v41, %v501_v32 }
  0x43   : > { %380 = vst.msk [vmem:[#allocation3 + $0xd0] sm:$0xff] %vm285_vm1, %v369_v36  ;;  %v570_v44 = vld [vmem:[#allocation3 + $0x20] sm:$0xff]  ;;  %v509_v46 = vpack.c.bf16 %v503_v42, %v502_v41 }
  0x44   : > { %381 = vst.msk [vmem:[#allocation3 + $0xd8] sm:$0xff] %vm285_vm1, %v370_v37  ;;  %v576_v47 = vpack.c.bf16 %v570_v44, %v387_v38  ;;  %v389_v48 = vld [vmem:[#allocation3 + $0x28] sm:$0xff] }
  0x45   : > { %v504_v49 = vld [vmem:[#allocation3 + $0xc0] sm:$0xff]  ;;  %v394_v51 = vpack.c.bf16 %v389_v48, %v570_v44  ;;  %341 = vst.msk [vmem:[#allocation3 + $0x48] sm:$0xff] %vm285_vm1, %v331_v9 }
  0x46   : > { %v505_v50 = vld [vmem:[#allocation3 + $0xc8] sm:$0xff]  ;;  %362 = vst.msk [vmem:[#allocation3 + $0x98] sm:$0xff] %vm285_vm1, %v351_v10  ;;  %v710_v13 = vpack.c.bf16 %v504_v49, %v503_v42 }
  0x47   : > { %v572_v52 = vld [vmem:[#allocation3 + $0x30] sm:$0xff]  ;;  %v510_v54 = vpack.c.bf16 %v505_v50, %v504_v49  ;;  %383 = vst.msk [vmem:[#allocation3 + $0xe8] sm:$0xff] %vm285_vm1, %v372_v11 }
  0x48   : > { %v330_v39 = vld [vmem:[#allocation2 + $0x80] sm:$0xff]  ;;  %v577_v55 = vpack.c.bf16 %v572_v52, %v389_v48 }
  0x49   : > { %v350_v40 = vld [vmem:[#allocation2 + $0x81] sm:$0xff]  ;;  %340 = vst.msk [vmem:[#allocation3 + $0x40] sm:$0xff] %vm285_vm1, %v330_v39  ;;  %v391_v56 = vld [vmem:[#allocation3 + $0x38] sm:$0xff] }
  0x4a   : > { %361 = vst.msk [vmem:[#allocation3 + $0x90] sm:$0xff] %vm285_vm1, %v350_v40  ;;  %v506_v59 = vld [vmem:[#allocation3 + $0xd0] sm:$0xff]  ;;  %v395_v62 = vpack.c.bf16 %v391_v56, %v572_v52 }
  0x4b   : > { %v507_v61 = vld [vmem:[#allocation3 + $0xd8] sm:$0xff] }
  0x4c   : > { %v511_v8 = vpack.c.bf16 %v507_v61, %v506_v59  ;;  %v775_v17 = vld [vmem:[#allocation3 + $0x48] sm:$0xff] }
  0x4d   : > { %v842_v19 = vld [vmem:[#allocation3 + $0x98] sm:$0xff] }
  0x4e   : > { %v909_v16 = vld [vmem:[#allocation3 + $0xe8] sm:$0xff] }
  0x4f   : > { %1139 = vmatmul.msk.bf16.gmra.mxu1 %vm285_vm1, %v393_v43 }
  0x50   : > { %1154 = vmatmul.msk.bf16.gmra.mxu0 %vm285_vm1, %v643_v45  ;;  %v574_v1 = vld [vmem:[#allocation3 + $0x40] sm:$0xff] }
  0x51   : > { %1144 = vmatmul.msk.bf16.gmra.mxu2 %vm285_vm1, %v509_v46  ;;  %v641_v58 = vld [vmem:[#allocation3 + $0x90] sm:$0xff]  ;;  %v578_v60 = vpack.c.bf16 %v574_v1, %v391_v56 }
  0x52   : > { %1149 = vmatmul.msk.bf16.gmra.mxu3 %vm285_vm1, %v576_v47  ;;  %v645_v5 = vpack.c.bf16 %v641_v58, %v1397_v6  ;;  %v371_v6 = vld [vmem:[#allocation2 + $0x82] sm:$0xff]  ;;  %v846_v2 = vpack.c.bf16 %v842_v19, %v641_v58 }
  0x53   : > { %382 = vst.msk [vmem:[#allocation3 + $0xe0] sm:$0xff] %vm285_vm1, %v371_v6 }
  0x5a   : > { %v708_v15 = vld [vmem:[#allocation3 + $0xe0] sm:$0xff] }
  0x5b   : > { %v712_v18 = vpack.c.bf16 %v708_v15, %v507_v61  ;;  %v913_v20 = vpack.c.bf16 %v909_v16, %v708_v15 }
  0x5f   : > { %1140 = vmatmul.msk.bf16.gmra.mxu1 %vm285_vm1, %v394_v51 }
  0x60   : > { %1155 = vmatmul.msk.bf16.gmra.mxu0 %vm285_vm1, %v644_v53 }
  0x61   : > { %1145 = vmatmul.msk.bf16.gmra.mxu2 %vm285_vm1, %v510_v54 }
  0x62   : > { %1150 = vmatmul.msk.bf16.gmra.mxu3 %vm285_vm1, %v577_v55 }
  0x6f   : > { %1141 = vmatmul.msk.bf16.gmra.mxu1 %vm285_vm1, %v395_v62 }
  0x70   : > { %1156 = vmatmul.msk.bf16.gmra.mxu0 %vm285_vm1, %v645_v5 }
  0x71   : > { %1146 = vmatmul.msk.bf16.gmra.mxu2 %vm285_vm1, %v511_v8 }
  0x72   : > { %1151 = vmatmul.msk.bf16.gmra.mxu3 %vm285_vm1, %v578_v60 }
  0x7f   : > { %1158 = vmatmul.msk.bf16.vlgmr.msra.gmra.mxu1 %vm285_vm1, %v709_v0 }
  0x80   : > { %1173 = vmatmul.msk.bf16.vlgmr.msra.gmra.mxu0 %vm285_vm1, %v509_v46 }
  0x81   : > { %1163 = vmatmul.msk.bf16.vlgmr.msra.gmra.mxu2 %vm285_vm1, %v393_v43 }
  0x82   : > { %1168 = vmatmul.msk.bf16.vlgmr.msra.gmra.mxu3 %vm285_vm1, %v1369_v57  ;;  %v711_v57 = vpack.c.bf16 %v506_v59, %v505_v50 }
  0x8f   : > { %1159 = vmatmul.msk.bf16.gmra.mxu1 %vm285_vm1, %v710_v13 }
  0x90   : > { %1174 = vmatmul.msk.bf16.gmra.mxu0 %vm285_vm1, %v510_v54 }
  0x91   : > { %1164 = vmatmul.msk.bf16.gmra.mxu2 %vm285_vm1, %v394_v51 }
  0x92   : > { %1169 = vmatmul.msk.bf16.gmra.mxu3 %vm285_vm1, %v1387_v63  ;;  %v779_v63 = vpack.c.bf16 %v775_v17, %v574_v1 }
  0x9f   : > { %1160 = vmatmul.msk.bf16.gmra.mxu1 %vm285_vm1, %v711_v57 }
  0xa0   : > { %1175 = vmatmul.msk.bf16.gmra.mxu0 %vm285_vm1, %v511_v8 }
  0xa1   : > { %1165 = vmatmul.msk.bf16.gmra.mxu2 %vm285_vm1, %v395_v62 }
  0xa2   : > { %1170 = vmatmul.msk.bf16.gmra.mxu3 %vm285_vm1, %v1405_v7 }
  0xa8   : > { %v1489_v14 = vpop.f32.mrf.mxu1 }
  0xad   : > { %v436_v21 = vpop.f32.mrf.mxu0 }
  0xaf   : > { %1161 = vmatmul.msk.bf16.gmra.mxu1 %vm285_vm1, %v712_v18 }
  0xb0   : > { %1176 = vmatmul.msk.bf16.gmra.mxu0 %vm285_vm1, %v913_v20  ;;  %v1493_v22 = vpop.f32.mrf.mxu2  ;;  %v1499_v23 = vpop.f32.mrf.mxu1 }
  0xb1   : > { %1166 = vmatmul.msk.bf16.gmra.mxu2 %vm285_vm1, %v779_v63 }
  0xb2   : > { %1171 = vmatmul.msk.bf16.gmra.mxu3 %vm285_vm1, %v846_v2  ;;  %v1497_v7 = vpop.f32.mrf.mxu3 }
  0xb5   : > { %v438_v24 = vpop.f32.mrf.mxu0 }
  0xb8   : > { %v1501_v25 = vpop.f32.mrf.mxu2 }
  0xba   : > { %v1503_v26 = vpop.f32.mrf.mxu3 }
  0xbc   : > { %v480_v27 = vpop.f32.mrf.mxu1 }
  0xbd   : > { %v672_v28 = vpop.f32.mrf.mxu0  ;;  %v481_v54 = vadd.f32 %v480_v27, %v436_v21 }
  0xc4   : > { %v538_v12 = vpop.f32.mrf.mxu2  ;;  %v482_v29 = vpop.f32.mrf.mxu1 }
  0xc5   : > { %v605_v30 = vpop.f32.mrf.mxu3  ;;  %v674_v31 = vpop.f32.mrf.mxu0  ;;  %v558_v55 = vadd.f32 %v538_v12, %v481_v54  ;;  %v483_v1 = vadd.f32 %v482_v29, %v438_v24 }
  0xc7   : > { %v625_v59 = vadd.f32 %v605_v30, %v558_v55 }
  0xc9   : > { %v692_v8 = vadd.f32 %v672_v28, %v625_v59 }
  0xcc   : > { %v540_v32 = vpop.f32.mrf.mxu2  ;;  %v485_v3 = vpop.f32.mrf.mxu1 }
  0xcd   : > { %v607_v33 = vpop.f32.mrf.mxu3  ;;  %v677_v34 = vpop.f32.mrf.mxu0  ;;  %v559_v5 = vadd.f32 %v540_v32, %v483_v1  ;;  %v486_v57 = vadd.f32 %v485_v3, %v1489_v14 }
  0xcf   : > { %v626_v9 = vadd.f32 %v607_v33, %v559_v5 }
  0xd1   : > { %v693_v18 = vadd.f32 %v674_v31, %v626_v9 }
  0xd4   : > { %v543_v35 = vpop.f32.mrf.mxu2  ;;  %v487_v4 = vpop.f32.mrf.mxu1 }
  0xd5   : > { %v610_v36 = vpop.f32.mrf.mxu3  ;;  %v1505_v37 = vpop.f32.mrf.mxu0  ;;  %v560_v16 = vadd.f32 %v543_v35, %v486_v57  ;;  %v488_v28 = vadd.f32 %v487_v4, %v1499_v23 }
  0xd7   : > { %v627_v2 = vadd.f32 %v610_v36, %v560_v16 }
  0xd9   : > { %v694_v32 = vadd.f32 %v677_v34, %v627_v2 }
  0xdc   : > { %v545_v38 = vpop.f32.mrf.mxu2  ;;  %v1507_v39 = vpop.f32.mrf.mxu1 }
  0xdd   : > { %v612_v40 = vpop.f32.mrf.mxu3  ;;  %v1509_v41 = vpop.f32.mrf.mxu0  ;;  %v561_v29 = vadd.f32 %v545_v38, %v488_v28  ;;  %v491_v5 = vadd.f32 %v1507_v39, %v1493_v22 }
  0xe4   : > { %v1511_v42 = vpop.f32.mrf.mxu2  ;;  %v1513_v43 = vpop.f32.mrf.mxu1 }
  0xe5   : > { %v1515_v44 = vpop.f32.mrf.mxu3  ;;  %v1517_v45 = vpop.f32.mrf.mxu0 }
  0xec   : > { %v1519_v46 = vpop.f32.mrf.mxu2  ;;  %v1521_v47 = vpop.f32.mrf.mxu1 }
  0xed   : > { %v1523_v48 = vpop.f32.mrf.mxu3  ;;  %v1525_v49 = vpop.f32.mrf.mxu0 }
  0xf4   : > { %v1527_v50 = vpop.f32.mrf.mxu2  ;;  %v1529_v51 = vpop.f32.mrf.mxu1 }
  0xf5   : > { %v1531_v52 = vpop.f32.mrf.mxu3  ;;  %v1533_v53 = vpop.f32.mrf.mxu0 }
  0xfc   : > { %v1535_v56 = vpop.f32.mrf.mxu2  ;;  %v739_v58 = vpop.f32.mrf.mxu1 }
  0xfd   : > { %v1537_v61 = vpop.f32.mrf.mxu3  ;;  %v940_v62 = vpop.f32.mrf.mxu0  ;;  %v759_v60 = vadd.f32 %v739_v58, %v692_v8 }
 0x104   : > { %v806_v0 = vpop.f32.mrf.mxu2  ;;  %v741_v6 = vpop.f32.mrf.mxu1 }
 0x105   : > { %v826_v10 = vadd.f32 %v806_v0, %v759_v60  ;;  %v873_v11 = vpop.f32.mrf.mxu3  ;;  %v942_v13 = vpop.f32.mrf.mxu0  ;;  %v760_v20 = vadd.f32 %v741_v6, %v693_v18  ;;  %v562_v0 = vadd.f32 %v1511_v42, %v491_v5 }
 0x107   : > { %v893_v15 = vadd.f32 %v873_v11, %v826_v10 }
 0x109   : > { %v960_v17 = vadd.f32 %v940_v62, %v893_v15  ;;  %v628_v62 = vadd.f32 %v612_v40, %v561_v29 }
 0x10b   : > { %v968_v19 = vpack.c.bf16 %v960_v17, %v960_v17  ;;  %v1007_v30 = vmul.f32 %v960_v17, %v960_v17  ;;  %v985_v3 = vsel %vm285_vm1, %v960_v17, 0.0  ;;  %v695_v40 = vadd.f32 %v1505_v37, %v628_v62 }
 0x10c   : > { %v808_v21 = vpop.f32.mrf.mxu2  ;;  %v744_v63 = vpop.f32.mrf.mxu1  ;;  %v629_v17 = vadd.f32 %v1515_v44, %v562_v0  ;;  %v493_v37 = vadd.f32 %v1513_v43, %v1501_v25 }
 0x10d   : > { %977 = vst.msk [vmem:[%s1545_s26] sm:$0xf] %vm976_vm4, %v968_v19  ;;  %v827_v14 = vadd.f32 %v808_v21, %v760_v20  ;;  %v875_v24 = vpop.f32.mrf.mxu3  ;;  %v945_v27 = vpop.f32.mrf.mxu0  ;;  %v761_v36 = vadd.f32 %v744_v63, %v694_v32  ;;  %v1015_v1 = vsel %vm285_vm1, %v1007_v30, 0.0 }
 0x10e   : > { %v563_v20 = vadd.f32 %v1519_v46, %v493_v37  ;;  %v696_v63 = vadd.f32 %v1509_v41, %v629_v17  ;;  %v496_v41 = vadd.f32 %v1521_v47, %v1497_v7 }
 0x10f   : > { %v894_v12 = vadd.f32 %v875_v24, %v827_v14 }
 0x110   : > { %v630_v30 = vadd.f32 %v1523_v48, %v563_v20 }
 0x111   : > { %v961_v31 = vadd.f32 %v942_v13, %v894_v12 }
 0x113   : > { %v969_v33 = vpack.c.bf16 %v961_v31, %v961_v31  ;;  %v986_v35 = vsel %vm285_vm1, %v961_v31, 0.0  ;;  %v1008_v54 = vmul.f32 %v961_v31, %v961_v31 }
 0x114   : > { %v987_v55 = vadd.f32 %v986_v35, %v985_v3  ;;  %v811_v58 = vpop.f32.mrf.mxu2  ;;  %v746_v59 = vpop.f32.mrf.mxu1  ;;  %v564_v3 = vadd.f32 %v1527_v50, %v496_v41  ;;  %v697_v35 = vadd.f32 %v1517_v45, %v630_v30  ;;  %v498_v45 = vadd.f32 %v1529_v51, %v1503_v26 }
 0x115   : > { %978 = vst.msk [vmem:[%s1545_s26 + $0x4] sm:$0xf] %vm976_vm4, %v969_v33  ;;  %v1016_v23 = vsel %vm285_vm1, %v1008_v54, 0.0  ;;  %v828_v4 = vadd.f32 %v811_v58, %v761_v36  ;;  %v878_v38 = vpop.f32.mrf.mxu3  ;;  %v947_v60 = vpop.f32.mrf.mxu0  ;;  %v762_v13 = vadd.f32 %v746_v59, %v695_v40 }
 0x116   : > { %v1017_v34 = vadd.f32 %v1016_v23, %v1015_v1  ;;  %v631_v1 = vadd.f32 %v1531_v52, %v564_v3 }
 0x117   : > { %v895_v8 = vadd.f32 %v878_v38, %v828_v4 }
 0x119   : > { %v962_v6 = vadd.f32 %v945_v27, %v895_v8  ;;  %v698_v8 = vadd.f32 %v1525_v49, %v631_v1 }
 0x11b   : > { %v970_v9 = vpack.c.bf16 %v962_v6, %v962_v6  ;;  %v988_v10 = vsel %vm285_vm1, %v962_v6, 0.0  ;;  %v1009_v11 = vmul.f32 %v962_v6, %v962_v6 }
 0x11c   : > { %v989_v57 = vadd.f32 %v988_v10, %v987_v55  ;;  %v813_v15 = vpop.f32.mrf.mxu2  ;;  %v749_v16 = vpop.f32.mrf.mxu1 }
 0x11d   : > { %979 = vst.msk [vmem:[%s1545_s26 + $0x8] sm:$0xf] %vm976_vm4, %v970_v9  ;;  %v1018_v22 = vsel %vm285_vm1, %v1009_v11, 0.0  ;;  %v829_v39 = vadd.f32 %v813_v15, %v762_v13  ;;  %v880_v18 = vpop.f32.mrf.mxu3  ;;  %v950_v2 = vpop.f32.mrf.mxu0  ;;  %v763_v27 = vadd.f32 %v749_v16, %v696_v63 }
 0x11e   : > { %v1019_v42 = vadd.f32 %v1018_v22, %v1017_v34  ;;  %v565_v34 = vadd.f32 %v1535_v56, %v498_v45 }
 0x11f   : > { %v896_v19 = vadd.f32 %v880_v18, %v829_v39 }
 0x120   : > { %v632_v10 = vadd.f32 %v1537_v61, %v565_v34 }
 0x121   : > { %v963_v21 = vadd.f32 %v947_v60, %v896_v19 }
 0x122   : > { %v699_v16 = vadd.f32 %v1533_v53, %v632_v10 }
 0x123   : > { %v971_v14 = vpack.c.bf16 %v963_v21, %v963_v21  ;;  %v990_v44 = vsel %vm285_vm1, %v963_v21, 0.0  ;;  %v1010_v24 = vmul.f32 %v963_v21, %v963_v21 }
 0x124   : > { %v991_v28 = vadd.f32 %v990_v44, %v989_v57  ;;  %v816_v12 = vpop.f32.mrf.mxu2  ;;  %v751_v29 = vpop.f32.mrf.mxu1 }
 0x125   : > { %980 = vst.msk [vmem:[%s1545_s26 + $0xc] sm:$0xf] %vm976_vm4, %v971_v14  ;;  %v1020_v25 = vsel %vm285_vm1, %v1010_v24, 0.0  ;;  %v830_v43 = vadd.f32 %v816_v12, %v763_v27  ;;  %v883_v46 = vpop.f32.mrf.mxu3  ;;  %v764_v55 = vadd.f32 %v751_v29, %v697_v35  ;;  %v952_v59 = vpop.f32.mrf.mxu0 }
 0x126   : > { %v1021_v31 = vadd.f32 %v1020_v25, %v1019_v42 }
 0x127   : > { %v897_v32 = vadd.f32 %v883_v46, %v830_v43 }
 0x129   : > { %v964_v33 = vadd.f32 %v950_v2, %v897_v32 }
 0x12b   : > { %v972_v54 = vpack.c.bf16 %v964_v33, %v964_v33  ;;  %v992_v48 = vsel %vm285_vm1, %v964_v33, 0.0  ;;  %v1011_v36 = vmul.f32 %v964_v33, %v964_v33 }
 0x12c   : > { %v993_v58 = vadd.f32 %v992_v48, %v991_v28  ;;  %v818_v62 = vpop.f32.mrf.mxu2  ;;  %v754_v4 = vpop.f32.mrf.mxu1 }
 0x12d   : > { %981 = vst.msk [vmem:[%s1545_s26 + $0x10] sm:$0xf] %vm976_vm4, %v972_v54  ;;  %v1022_v7 = vsel %vm285_vm1, %v1011_v36, 0.0  ;;  %v831_v47 = vadd.f32 %v818_v62, %v764_v55  ;;  %v885_v50 = vpop.f32.mrf.mxu3  ;;  %v765_v6 = vadd.f32 %v754_v4, %v698_v8  ;;  %v955_v13 = vpop.f32.mrf.mxu0 }
 0x12e   : > { %v1023_v23 = vadd.f32 %v1022_v7, %v1021_v31 }
 0x12f   : > { %v898_v38 = vadd.f32 %v885_v50, %v831_v47 }
 0x131   : > { %v965_v5 = vadd.f32 %v952_v59, %v898_v38 }
 0x133   : > { %v973_v60 = vpack.c.bf16 %v965_v5, %v965_v5  ;;  %v994_v52 = vsel %vm285_vm1, %v965_v5, 0.0  ;;  %v1012_v0 = vmul.f32 %v965_v5, %v965_v5 }
 0x134   : > { %v995_v40 = vadd.f32 %v994_v52, %v993_v58  ;;  %v821_v9 = vpop.f32.mrf.mxu2  ;;  %v756_v49 = vpop.f32.mrf.mxu1 }
 0x135   : > { %982 = vst.msk [vmem:[%s1545_s26 + $0x14] sm:$0xf] %vm976_vm4, %v973_v60  ;;  %v1024_v26 = vsel %vm285_vm1, %v1012_v0, 0.0  ;;  %v832_v51 = vadd.f32 %v821_v9, %v765_v6  ;;  %v888_v11 = vpop.f32.mrf.mxu3  ;;  %v766_v61 = vadd.f32 %v756_v49, %v699_v16  ;;  %v957_v2 = vpop.f32.mrf.mxu0 }
 0x136   : > { %v1025_v56 = vadd.f32 %v1024_v26, %v1023_v23 }
 0x137   : > { %v899_v57 = vadd.f32 %v888_v11, %v832_v51 }
 0x139   : > { %v966_v15 = vadd.f32 %v955_v13, %v899_v57 }
 0x13b   : > { %v974_v17 = vpack.c.bf16 %v966_v15, %v966_v15  ;;  %v996_v22 = vsel %vm285_vm1, %v966_v15, 0.0  ;;  %v1013_v39 = vmul.f32 %v966_v15, %v966_v15 }
 0x13c   : > { %v997_v18 = vadd.f32 %v996_v22, %v995_v40  ;;  %v823_v42 = vpop.f32.mrf.mxu2 }
 0x13d   : > { %983 = vst.msk [vmem:[%s1545_s26 + $0x18] sm:$0xf] %vm976_vm4, %v974_v17  ;;  %v1026_v37 = vsel %vm285_vm1, %v1013_v39, 0.0  ;;  %v833_v19 = vadd.f32 %v823_v42, %v766_v61  ;;  %v890_v21 = vpop.f32.mrf.mxu3 }
 0x13e   : > { %v1027_v20 = vadd.f32 %v1026_v37, %v1025_v56 }
 0x13f   : > { %v900_v63 = vadd.f32 %v890_v21, %v833_v19 }
 0x141   : > { %v967_v14 = vadd.f32 %v957_v2, %v900_v63 }
 0x143   : > { %v975_v53 = vpack.c.bf16 %v967_v14, %v967_v14  ;;  %v998_v44 = vsel %vm285_vm1, %v967_v14, 0.0  ;;  %v1014_v24 = vmul.f32 %v967_v14, %v967_v14 }
 0x144   : > { %v999_v27 = vadd.f32 %v998_v44, %v997_v18 }
 0x145   : > { %984 = vst.msk [vmem:[%s1545_s26 + $0x1c] sm:$0xf] %vm976_vm4, %v975_v53  ;;  %v1028_v28 = vsel %vm285_vm1, %v1014_v24, 0.0 }
 0x146   : > { %v1000_v12 = vrot.slane %v999_v27, 4  ;;  %v1029_v29 = vadd.f32 %v1028_v28, %v1027_v20 }
 0x148   : > { %v1001_v30 = vadd.f32 %v1000_v12, %v999_v27  ;;  %v1030_v25 = vrot.slane %v1029_v29, 4 }
 0x14a   : > { %v1002_v43 = vrot.slane %v1001_v30, 2  ;;  %v1031_v46 = vadd.f32 %v1030_v25, %v1029_v29 }
 0x14c   : > { %v1003_v31 = vadd.f32 %v1002_v43, %v1001_v30  ;;  %v1032_v41 = vrot.slane %v1031_v46, 2 }
 0x14e   : > { %v1004_v32 = vrot.slane %v1003_v31, 1  ;;  %v1033_v3 = vadd.f32 %v1032_v41, %v1031_v46 }
 0x150   : > { %v1005_v33 = vadd.f32 %v1004_v32, %v1003_v31  ;;  %v1034_v35 = vrot.slane %v1033_v3, 1 }
 0x152   : > { %1006 = vst.msk [vmem:[%s235_s29] sm:$0x1] %vm292_vm3, %v1005_v33  ;;  %v1035_v54 = vadd.f32 %v1034_v35, %v1033_v3 }
 0x154   : > { %1036 = vst.msk [vmem:[%s235_s29 + $0x1] sm:$0x1] %vm292_vm3, %v1035_v54 }
 0x155 PF: > { %s16_s18 = sadd.s32 1, %s1220_s18  }
 0x156   : > { %p13_p4 = scmp.ge.s32.totalorder %s16_s18, 4  }
 0x158   :  { %15 = sbr.rel (!%p13_p4) target bundleno = 1 (0x1), region = 96 }

// kernel: resblock_forward.3
= control target key start
LH: loop header
LB: loop body
LE: loop exit
PB: predicated region body
PF: predicated region fallthrough
CT: control target
= control target key end

     0   :  { %s1550_s30 = smov 0   ;;  %s1912_s0 = inlined_call_operand.vmem [shape: f32[2,9,9,4], index: 0, kind: input, shape index: {}]   ;;  %s1913_s1 = inlined_call_operand.vmem [shape: f32[2,9,9,4], index: 1, kind: input, shape index: {}]   ;;  %s1914_s2 = inlined_call_operand.vmem [shape: f32[2,9,9,4], index: 2, kind: input, shape index: {}]   ;;  %s1915_s3 = inlined_call_operand.vmem [shape: f32[2,9,9,4], index: 3, kind: input, shape index: {}]   ;;  %s1916_s4 = inlined_call_operand.vmem [shape: bf16[9,4,8], index: 4, kind: input, shape index: {}]   ;;  %s1917_s5 = inlined_call_operand.vmem [shape: bf16[4,8], index: 5, kind: input, shape index: {}]   ;;  %s1918_s6 = inlined_call_operand.vmem [shape: bf16[2,8,8,8], index: 6, kind: output, shape index: {0}]   ;;  %s1919_s7 = inlined_call_operand.vmem [shape: f32[2,2,8], index: 7, kind: output, shape index: {1}]   ;;  %s1920_s8 = inlined_call_operand.vmem [shape: bf16[2,8,8,8], index: 8, kind: output, shape index: {2}]   ;;  %s1921_s9 = inlined_call_operand.vmem [shape: f32[2,2,8], index: 9, kind: output, shape index: {3}]  }
   0x1 LB: > { %s1390_s10 = sadd.s32 4294967295, %s1498_s30   ;;  %p1394_p0 = scmp.ge.s32.totalorder %s1498_s30, 1  ;;  %s1498_s30 = sphi %s1550_s30, %s20_s30  }
   0x2   : > { %p324_p1 = scmp.lt.s32.totalorder %s1498_s30, 3 }
   0x4   : > { %p325_p2 = pnand %p1394_p0, %p324_p1 }
   0x5   : > { %p388_p3 = scmp.lt.s32.totalorder (!%p325_p2), %s1390_s10, 1 }
   0x6   : > { %328 = sbr.rel (%p325_p2) target bundleno = 328 (0x148), region = 44 }
   0xb   : > { %v1405_v0 = vld [vmem:[%s1916_s4 + $0x2] sm:$0x3]  ;;  %vm467_vm0 = vcmask 1041408   ;;  %v439_v1 = vld [vmem:[%s1916_s4] sm:$0x3]  ;;  %s1923_s10 = smov (!%p388_p3, %s1390_s10), 1 }
   0xc   : > { %v469_v2 = vsel %vm467_vm0, %v1405_v0, 0  ;;  %v513_v3 = vsel %vm467_vm0, %v439_v1, 0  ;;  %v1414_v4 = vld [vmem:[%s1916_s4 + $0x4] sm:$0x3]  ;;  %v1419_v6 = vld [vmem:[%s1916_s4 + $0x6] sm:$0x3] }
   0xd   : > { %1481 = vmatpush.bf16.msra.mxu2 %v469_v2  ;;  %522 = vmatpush.bf16.msra.mxu1 %v513_v3  ;;  %v571_v5 = vsel %vm467_vm0, %v1414_v4, 0  ;;  %v1424_v7 = vld [vmem:[%s1916_s4 + $0x8] sm:$0x3]  ;;  %v637_v8 = vsel %vm467_vm0, %v1419_v6, 0  ;;  %v1429_v10 = vld [vmem:[%s1916_s4 + $0xa] sm:$0x3] }
   0xe   : > { %1482 = vmatpush.bf16.msra.mxu3 %v513_v3  ;;  %478 = vmatpush.bf16.msra.mxu0 %v469_v2  ;;  %v703_v9 = vsel %vm467_vm0, %v1424_v7, 0  ;;  %s1584_s23 = smul.u32 144, %s1923_s10  ;;  %v769_v11 = vsel %vm467_vm0, %v1429_v10, 0  ;;  %vm454_vm1 = vcmask 31744   ;;  %v1442_v24 = vld [vmem:[%s1916_s4 + $0xc] sm:$0x3] }
   0xf   : > { %v836_v25 = vsel %vm467_vm0, %v1442_v24, 0  ;;  %v1455_v26 = vld [vmem:[%s1916_s4 + $0xe] sm:$0x3]  ;;  %v1468_v27 = vld [vmem:[%s1916_s4 + $0x10] sm:$0x3]  ;;  %vm1016_vm2 = vcmask 60416  }
  0x10   : > { %s1591_s26 = scalar_lea.vmem %s1912_s0, %s1584_s23  ;;  %s1597_s29 = scalar_lea.vmem %s1913_s1, %s1584_s23  ;;  %v903_v28 = vsel %vm467_vm0, %v1455_v26, 0  ;;  %v969_v29 = vsel %vm467_vm0, %v1468_v27, 0  ;;  %v1091_v30 = vld [vmem:[%s1917_s5] sm:$0x3]  ;;  %vm1025_vm3 = vcmask 64512   ;;  %vm1047_vm4 = vcmask 57344  }
  0x11   : > { %580 = vmatpush.bf16.msrb.mxu2 %v571_v5  ;;  %778 = vmatpush.bf16.msrb.mxu1 %v769_v11  ;;  %v1600_v12 = vld [vmem:[%s1597_s29 + $0x40] sm:$0xff]  ;;  %v1603_v13 = vld [vmem:[%s1597_s29 + $0x50] sm:$0xff]  ;;  %v1105_v31 = vsel %vm467_vm0, %v1091_v30, 0  ;;  %s1685_s21 = scalar_lea.vmem %s1914_s2, %s1584_s23  ;;  %s1691_s25 = scalar_lea.vmem %s1915_s3, %s1584_s23 }
  0x12   : > { %646 = vmatpush.bf16.msrb.mxu3 %v637_v8  ;;  %712 = vmatpush.bf16.msrb.mxu0 %v703_v9  ;;  %v427_v14 = vld [vmem:[%s1591_s26] sm:$0xff]  ;;  %v450_v15 = vpack.c.bf16 %v1603_v13, %v1600_v12  ;;  %v1609_v16 = vld [vmem:[%s1591_s26 + $0x10] sm:$0xff]  ;;  %s1479_s23 = sshll.u32 %s1923_s10, 5  ;;  %s1401_s13 = sshll.u32 %s1923_s10, 1 }
  0x13   : > { %v1612_v17 = vld [vmem:[%s1591_s26 + $0x40] sm:$0xff]  ;;  %v1615_v18 = vld [vmem:[%s1591_s26 + $0x50] sm:$0xff]  ;;  %v435_v19 = vpack.c.bf16 %v1609_v16, %v427_v14  ;;  %s1799_s28 = scalar_lea.vmem %s1920_s8, %s1479_s23  ;;  %s1817_s12 = scalar_lea.vmem %s1918_s6, %s1479_s23 }
  0x14   : > { %v437_v20 = vpack.c.bf16 %v1615_v18, %v1612_v17  ;;  %v440_v21 = vld [vmem:[%s1597_s29] sm:$0xff]  ;;  %v1622_v22 = vld [vmem:[%s1597_s29 + $0x10] sm:$0xff]  ;;  %1408 = vmatmul.msk.bf16.vlgmr.msra.gmra.mxu2 %vm454_vm1, %v450_v15  ;;  %s425_s16 = scalar_lea.vmem %s1921_s9, %s1401_s13  ;;  %s416_s19 = scalar_lea.vmem %s1919_s7, %s1401_s13 }
  0x15   : > { %v448_v23 = vpack.c.bf16 %v1622_v22, %v440_v21  ;;  %1410 = vmatmul.msk.bf16.vlgmr.msra.gmra.mxu1 %vm454_vm1, %v435_v19  ;;  %845 = vmatpush.bf16.msra.mxu2 %v836_v25  ;;  %v1646_v32 = vld [vmem:[%s1597_s29 + $0x60] sm:$0xff]  ;;  %v1649_v33 = vld [vmem:[%s1597_s29 + $0x70] sm:$0xff] }
  0x16   : > { %1412 = vmatmul.msk.bf16.vlgmr.msra.gmra.mxu3 %vm454_vm1, %v437_v20  ;;  %1114 = vmatpush.bf16.msra.mxu1 %v1105_v31  ;;  %v1652_v34 = vld [vmem:[%s1591_s26 + $0x20] sm:$0xff]  ;;  %v1655_v35 = vld [vmem:[%s1591_s26 + $0x30] sm:$0xff]  ;;  %v451_v40 = vpack.c.bf16 %v1649_v33, %v1646_v32 }
  0x17   : > { %1406 = vmatmul.msk.bf16.vlgmr.msra.gmra.mxu0 %vm454_vm1, %v448_v23  ;;  %912 = vmatpush.bf16.msra.mxu3 %v903_v28  ;;  %v1658_v36 = vld [vmem:[%s1591_s26 + $0x60] sm:$0xff]  ;;  %v1661_v37 = vld [vmem:[%s1591_s26 + $0x70] sm:$0xff]  ;;  %v436_v41 = vpack.c.bf16 %v1655_v35, %v1652_v34  ;;  %v817_v4 = vpack.c.bf16 %v1652_v34, %v1609_v16 }
  0x18   : > { %978 = vmatpush.bf16.msra.mxu0 %v969_v29  ;;  %v1664_v38 = vld [vmem:[%s1597_s29 + $0x20] sm:$0xff]  ;;  %v1667_v39 = vld [vmem:[%s1597_s29 + $0x30] sm:$0xff]  ;;  %v438_v42 = vpack.c.bf16 %v1661_v37, %v1658_v36 }
  0x19   : > { %v449_v43 = vpack.c.bf16 %v1667_v39, %v1664_v38  ;;  %v544_v44 = vld [vmem:[%s1591_s26 + $0x1] sm:$0xff]  ;;  %v1695_v45 = vld [vmem:[%s1591_s26 + $0x11] sm:$0xff]  ;;  %v884_v21 = vpack.c.bf16 %v1664_v38, %v1622_v22 }
  0x1a   : > { %v610_v46 = vld [vmem:[%s1685_s21] sm:$0xff]  ;;  %v611_v47 = vld [vmem:[%s1685_s21 + $0x10] sm:$0xff]  ;;  %v552_v52 = vpack.c.bf16 %v1695_v45, %v544_v44  ;;  %v819_v44 = vpack.c.bf16 %v1658_v36, %v1615_v18 }
  0x1b   : > { %v742_v48 = vld [vmem:[%s1685_s21 + $0x1] sm:$0xff]  ;;  %v743_v49 = vld [vmem:[%s1685_s21 + $0x11] sm:$0xff]  ;;  %v618_v53 = vpack.c.bf16 %v611_v47, %v610_v46 }
  0x1c   : > { %v676_v50 = vld [vmem:[%s1691_s25] sm:$0xff]  ;;  %v677_v51 = vld [vmem:[%s1691_s25 + $0x10] sm:$0xff]  ;;  %v750_v54 = vpack.c.bf16 %v743_v49, %v742_v48 }
  0x1d   : > { %v684_v55 = vpack.c.bf16 %v677_v51, %v676_v50  ;;  %v546_v56 = vld [vmem:[%s1591_s26 + $0x21] sm:$0xff]  ;;  %v547_v57 = vld [vmem:[%s1591_s26 + $0x31] sm:$0xff] }
  0x1e   : > { %v612_v58 = vld [vmem:[%s1685_s21 + $0x20] sm:$0xff]  ;;  %v613_v59 = vld [vmem:[%s1685_s21 + $0x30] sm:$0xff]  ;;  %v553_v0 = vpack.c.bf16 %v547_v57, %v546_v56  ;;  %v950_v38 = vpack.c.bf16 %v546_v56, %v1695_v45  ;;  %v886_v45 = vpack.c.bf16 %v1646_v32, %v1603_v13 }
  0x1f   : > { %v744_v60 = vld [vmem:[%s1685_s21 + $0x21] sm:$0xff]  ;;  %v745_v61 = vld [vmem:[%s1685_s21 + $0x31] sm:$0xff]  ;;  %v619_v1 = vpack.c.bf16 %v613_v59, %v612_v58 }
  0x20   : > { %v678_v62 = vld [vmem:[%s1691_s25 + $0x20] sm:$0xff]  ;;  %v679_v63 = vld [vmem:[%s1691_s25 + $0x30] sm:$0xff]  ;;  %v751_v2 = vpack.c.bf16 %v745_v61, %v744_v60 }
  0x21   : > { %v685_v3 = vpack.c.bf16 %v679_v63, %v678_v62  ;;  %v548_v5 = vld [vmem:[%s1591_s26 + $0x41] sm:$0xff]  ;;  %v549_v6 = vld [vmem:[%s1591_s26 + $0x51] sm:$0xff] }
  0x22   : > { %v614_v7 = vld [vmem:[%s1685_s21 + $0x40] sm:$0xff]  ;;  %v615_v8 = vld [vmem:[%s1685_s21 + $0x50] sm:$0xff]  ;;  %v554_v15 = vpack.c.bf16 %v549_v6, %v548_v5 }
  0x23   : > { %v746_v9 = vld [vmem:[%s1685_s21 + $0x41] sm:$0xff]  ;;  %v747_v10 = vld [vmem:[%s1685_s21 + $0x51] sm:$0xff]  ;;  %v620_v19 = vpack.c.bf16 %v615_v8, %v614_v7 }
  0x24   : > { %1409 = vmatmul.msk.bf16.gmra.mxu2 %vm454_vm1, %v451_v40  ;;  %v680_v11 = vld [vmem:[%s1691_s25 + $0x40] sm:$0xff]  ;;  %v681_v14 = vld [vmem:[%s1691_s25 + $0x50] sm:$0xff]  ;;  %v752_v20 = vpack.c.bf16 %v747_v10, %v746_v9 }
  0x25   : > { %1411 = vmatmul.msk.bf16.gmra.mxu1 %vm454_vm1, %v436_v41  ;;  %v686_v16 = vpack.c.bf16 %v681_v14, %v680_v11  ;;  %v550_v23 = vld [vmem:[%s1591_s26 + $0x61] sm:$0xff]  ;;  %v551_v24 = vld [vmem:[%s1591_s26 + $0x71] sm:$0xff]  ;;  %v818_v41 = vpack.c.bf16 %v1612_v17, %v1655_v35 }
  0x26   : > { %1413 = vmatmul.msk.bf16.gmra.mxu3 %vm454_vm1, %v438_v42  ;;  %v616_v25 = vld [vmem:[%s1685_s21 + $0x60] sm:$0xff]  ;;  %v617_v26 = vld [vmem:[%s1685_s21 + $0x70] sm:$0xff]  ;;  %v555_v31 = vpack.c.bf16 %v551_v24, %v550_v23  ;;  %v885_v42 = vpack.c.bf16 %v1600_v12, %v1667_v39  ;;  %v952_v35 = vpack.c.bf16 %v550_v23, %v549_v6 }
  0x27   : > { %1407 = vmatmul.msk.bf16.gmra.mxu0 %vm454_vm1, %v449_v43  ;;  %v748_v27 = vld [vmem:[%s1685_s21 + $0x61] sm:$0xff]  ;;  %v749_v28 = vld [vmem:[%s1685_s21 + $0x71] sm:$0xff]  ;;  %v621_v34 = vpack.c.bf16 %v617_v26, %v616_v25  ;;  %v951_v43 = vpack.c.bf16 %v548_v5, %v547_v57 }
  0x28   : > { %v682_v29 = vld [vmem:[%s1691_s25 + $0x60] sm:$0xff]  ;;  %v683_v30 = vld [vmem:[%s1691_s25 + $0x70] sm:$0xff]  ;;  %v753_v40 = vpack.c.bf16 %v749_v28, %v748_v27 }
  0x29   : > { %v687_v22 = vpack.c.bf16 %v683_v30, %v682_v29  ;;  %v1441_v48 = vld [vmem:[%s1591_s26 + $0x80] sm:$0xff] }
  0x2a   : > { %v1454_v49 = vld [vmem:[%s1597_s29 + $0x80] sm:$0xff] }
  0x2b   : > { %v1467_v51 = vld [vmem:[%s1591_s26 + $0x81] sm:$0xff] }
  0x2c   : > { %v953_v57 = vpack.c.bf16 %v1467_v51, %v551_v24 }
  0x34   : > { %1415 = vmatmul.msk.bf16.vlgmr.msrb.gmra.mxu2 %vm454_vm1, %v552_v52 }
  0x35   : > { %1430 = vmatmul.msk.bf16.vlgmr.msrb.gmra.mxu1 %vm454_vm1, %v750_v54 }
  0x36   : > { %1420 = vmatmul.msk.bf16.vlgmr.msrb.gmra.mxu3 %vm454_vm1, %v618_v53  ;;  %v820_v53 = vpack.c.bf16 %v1441_v48, %v1661_v37 }
  0x37   : > { %1425 = vmatmul.msk.bf16.vlgmr.msrb.gmra.mxu0 %vm454_vm1, %v684_v55 }
  0x44   : > { %1416 = vmatmul.msk.bf16.gmra.mxu2 %vm454_vm1, %v553_v0 }
  0x45   : > { %1431 = vmatmul.msk.bf16.gmra.mxu1 %vm454_vm1, %v751_v2 }
  0x46   : > { %1421 = vmatmul.msk.bf16.gmra.mxu3 %vm454_vm1, %v619_v1 }
  0x47   : > { %1426 = vmatmul.msk.bf16.gmra.mxu0 %vm454_vm1, %v685_v3 }
  0x54   : > { %1417 = vmatmul.msk.bf16.gmra.mxu2 %vm454_vm1, %v554_v15 }
  0x55   : > { %1432 = vmatmul.msk.bf16.gmra.mxu1 %vm454_vm1, %v752_v20 }
  0x56   : > { %1422 = vmatmul.msk.bf16.gmra.mxu3 %vm454_vm1, %v620_v19 }
  0x57   : > { %1427 = vmatmul.msk.bf16.gmra.mxu0 %vm454_vm1, %v686_v16 }
  0x64   : > { %1418 = vmatmul.msk.bf16.gmra.mxu2 %vm454_vm1, %v555_v31 }
  0x65   : > { %1433 = vmatmul.msk.bf16.gmra.mxu1 %vm454_vm1, %v753_v40 }
  0x66   : > { %1423 = vmatmul.msk.bf16.gmra.mxu3 %vm454_vm1, %v621_v34 }
  0x67   : > { %1428 = vmatmul.msk.bf16.gmra.mxu0 %vm454_vm1, %v687_v22 }
  0x74   : > { %1443 = vmatmul.msk.bf16.vlgmr.msra.gmra.mxu2 %vm454_vm1, %v817_v4 }
  0x75   : > { %1473 = vmatmul.msk.bf16.vlgmr.msra.gmra.mxu1 %vm454_vm1, %v684_v55  ;;  %v887_v55 = vpack.c.bf16 %v1454_v49, %v1649_v33 }
  0x76   : > { %1456 = vmatmul.msk.bf16.vlgmr.msra.gmra.mxu3 %vm454_vm1, %v884_v21 }
  0x77   : > { %1469 = vmatmul.msk.bf16.vlgmr.msra.gmra.mxu0 %vm454_vm1, %v950_v38 }
  0x84   : > { %1444 = vmatmul.msk.bf16.gmra.mxu2 %vm454_vm1, %v818_v41 }
  0x85   : > { %1474 = vmatmul.msk.bf16.gmra.mxu1 %vm454_vm1, %v685_v3 }
  0x86   : > { %1457 = vmatmul.msk.bf16.gmra.mxu3 %vm454_vm1, %v885_v42 }
  0x87   : > { %1470 = vmatmul.msk.bf16.gmra.mxu0 %vm454_vm1, %v951_v43 }
  0x92   : > { %v524_v17 = vpop.f32.mrf.mxu1 }
  0x94   : > { %v480_v12 = vpop.f32.mrf.mxu0  ;;  %1445 = vmatmul.msk.bf16.gmra.mxu2 %vm454_vm1, %v819_v44 }
  0x95   : > { %v525_v39 = vadd.f32 %v524_v17, %v480_v12  ;;  %1475 = vmatmul.msk.bf16.gmra.mxu1 %vm454_vm1, %v686_v16 }
  0x96   : > { %1458 = vmatmul.msk.bf16.gmra.mxu3 %vm454_vm1, %v886_v45 }
  0x97   : > { %1471 = vmatmul.msk.bf16.gmra.mxu0 %vm454_vm1, %v952_v35  ;;  %v490_v46 = vpop.f32.mrf.mxu2 }
  0x99   : > { %v534_v18 = vpop.f32.mrf.mxu3 }
  0x9a   : > { %v1769_v36 = vadd.f32 %v534_v18, %v490_v46  ;;  %v526_v47 = vpop.f32.mrf.mxu1 }
  0x9c   : > { %v482_v13 = vpop.f32.mrf.mxu0 }
  0x9d   : > { %v527_v32 = vadd.f32 %v526_v47, %v482_v13 }
  0x9f   : > { %v492_v50 = vpop.f32.mrf.mxu2 }
  0xa1   : > { %v536_v52 = vpop.f32.mrf.mxu3 }
  0xa2   : > { %v537_v54 = vadd.f32 %v536_v52, %v492_v50  ;;  %v529_v56 = vpop.f32.mrf.mxu1 }
  0xa4   : > { %v485_v58 = vpop.f32.mrf.mxu0  ;;  %1446 = vmatmul.msk.bf16.gmra.mxu2 %vm454_vm1, %v820_v53 }
  0xa5   : > { %v530_v59 = vadd.f32 %v529_v56, %v485_v58  ;;  %1476 = vmatmul.msk.bf16.gmra.mxu1 %vm454_vm1, %v687_v22 }
  0xa6   : > { %1459 = vmatmul.msk.bf16.gmra.mxu3 %vm454_vm1, %v887_v55 }
  0xa7   : > { %1472 = vmatmul.msk.bf16.gmra.mxu0 %vm454_vm1, %v953_v57  ;;  %v495_v60 = vpop.f32.mrf.mxu2 }
  0xa9   : > { %v539_v61 = vpop.f32.mrf.mxu3 }
  0xaa   : > { %v540_v62 = vadd.f32 %v539_v61, %v495_v60  ;;  %v531_v63 = vpop.f32.mrf.mxu1 }
  0xac   : > { %v487_v37 = vpop.f32.mrf.mxu0 }
  0xad   : > { %v532_v0 = vadd.f32 %v531_v63, %v487_v37 }
  0xaf   : > { %v497_v1 = vpop.f32.mrf.mxu2 }
  0xb1   : > { %v541_v33 = vpop.f32.mrf.mxu3 }
  0xb2   : > { %v542_v2 = vadd.f32 %v541_v33, %v497_v1  ;;  %v780_v3 = vpop.f32.mrf.mxu1 }
  0xb4   : > { %v714_v4 = vpop.f32.mrf.mxu0 }
  0xb7   : > { %v582_v5 = vpop.f32.mrf.mxu2 }
  0xb8   : > { %v602_v6 = vadd.f32 %v582_v5, %v525_v39 }
  0xb9   : > { %v648_v7 = vpop.f32.mrf.mxu3 }
  0xba   : > { %v668_v8 = vadd.f32 %v648_v7, %v602_v6  ;;  %v782_v9 = vpop.f32.mrf.mxu1 }
  0xbc   : > { %v716_v10 = vpop.f32.mrf.mxu0  ;;  %v734_v11 = vadd.f32 %v714_v4, %v668_v8 }
  0xbe   : > { %v1780_v14 = vadd.f32 %v780_v3, %v734_v11 }
  0xbf   : > { %v584_v15 = vpop.f32.mrf.mxu2 }
  0xc0   : > { %v603_v19 = vadd.f32 %v584_v15, %v527_v32 }
  0xc1   : > { %v650_v20 = vpop.f32.mrf.mxu3 }
  0xc2   : > { %v669_v16 = vadd.f32 %v650_v20, %v603_v19  ;;  %v785_v21 = vpop.f32.mrf.mxu1 }
  0xc4   : > { %v719_v23 = vpop.f32.mrf.mxu0  ;;  %v735_v24 = vadd.f32 %v716_v10, %v669_v16 }
  0xc6   : > { %v1782_v25 = vadd.f32 %v782_v9, %v735_v24 }
  0xc7   : > { %v587_v26 = vpop.f32.mrf.mxu2 }
  0xc8   : > { %v604_v27 = vadd.f32 %v587_v26, %v530_v59 }
  0xc9   : > { %v653_v28 = vpop.f32.mrf.mxu3 }
  0xca   : > { %v670_v29 = vadd.f32 %v653_v28, %v604_v27  ;;  %v787_v30 = vpop.f32.mrf.mxu1 }
  0xcc   : > { %v721_v31 = vpop.f32.mrf.mxu0  ;;  %v736_v34 = vadd.f32 %v719_v23, %v670_v29 }
  0xce   : > { %v1784_v40 = vadd.f32 %v785_v21, %v736_v34 }
  0xcf   : > { %v589_v22 = vpop.f32.mrf.mxu2 }
  0xd0   : > { %v605_v38 = vadd.f32 %v589_v22, %v532_v0 }
  0xd1   : > { %v655_v41 = vpop.f32.mrf.mxu3 }
  0xd2   : > { %v671_v42 = vadd.f32 %v655_v41, %v605_v38  ;;  %v790_v43 = vpop.f32.mrf.mxu1 }
  0xd4   : > { %v724_v44 = vpop.f32.mrf.mxu0  ;;  %v737_v45 = vadd.f32 %v721_v31, %v671_v42 }
  0xd6   : > { %v1786_v17 = vadd.f32 %v787_v30, %v737_v45 }
  0xd7   : > { %v592_v35 = vpop.f32.mrf.mxu2 }
  0xd8   : > { %v606_v12 = vadd.f32 %v592_v35, %v1769_v36 }
  0xd9   : > { %v658_v39 = vpop.f32.mrf.mxu3 }
  0xda   : > { %v672_v46 = vadd.f32 %v658_v39, %v606_v12  ;;  %v792_v18 = vpop.f32.mrf.mxu1 }
  0xdc   : > { %v726_v47 = vpop.f32.mrf.mxu0  ;;  %v738_v13 = vadd.f32 %v724_v44, %v672_v46 }
  0xde   : > { %v1789_v32 = vadd.f32 %v790_v43, %v738_v13 }
  0xdf   : > { %v594_v48 = vpop.f32.mrf.mxu2 }
  0xe0   : > { %v607_v49 = vadd.f32 %v594_v48, %v537_v54 }
  0xe1   : > { %v660_v50 = vpop.f32.mrf.mxu3 }
  0xe2   : > { %v673_v51 = vadd.f32 %v660_v50, %v607_v49  ;;  %v795_v52 = vpop.f32.mrf.mxu1 }
  0xe4   : > { %v729_v53 = vpop.f32.mrf.mxu0  ;;  %v739_v55 = vadd.f32 %v726_v47, %v673_v51 }
  0xe6   : > { %v1791_v56 = vadd.f32 %v792_v18, %v739_v55 }
  0xe7   : > { %v597_v57 = vpop.f32.mrf.mxu2 }
  0xe8   : > { %v608_v58 = vadd.f32 %v597_v57, %v540_v62 }
  0xe9   : > { %v663_v36 = vpop.f32.mrf.mxu3 }
  0xea   : > { %v674_v59 = vadd.f32 %v663_v36, %v608_v58  ;;  %v797_v60 = vpop.f32.mrf.mxu1 }
  0xec   : > { %v731_v61 = vpop.f32.mrf.mxu0  ;;  %v740_v63 = vadd.f32 %v729_v53, %v674_v59 }
  0xee   : > { %v1793_v37 = vadd.f32 %v795_v52, %v740_v63 }
  0xef   : > { %v599_v0 = vpop.f32.mrf.mxu2 }
  0xf0   : > { %v609_v54 = vadd.f32 %v599_v0, %v542_v2 }
  0xf1   : > { %v665_v1 = vpop.f32.mrf.mxu3 }
  0xf2   : > { %v675_v33 = vadd.f32 %v665_v1, %v609_v54  ;;  %v1801_v62 = vpop.f32.mrf.mxu1 }
  0xf3   : > { %v1136_v3 = vpack.c.bf16 %v1801_v62, %v1801_v62 }
  0xf4   : > { %v980_v4 = vpop.f32.mrf.mxu0  ;;  %v741_v5 = vadd.f32 %v731_v61, %v675_v33 }
  0xf5   : > { %1144 = vst.msk [vmem:[%s1799_s28] sm:$0xf] %vm1016_vm2, %v1136_v3 }
  0xf6   : > { %v1807_v2 = vadd.f32 %v797_v60, %v741_v5 }
  0xf7   : > { %v847_v6 = vpop.f32.mrf.mxu2 }
  0xf8   : > { %v867_v7 = vadd.f32 %v847_v6, %v1780_v14  ;;  %v1174_v6 = vmul.f32 %v1801_v62, %v1801_v62 }
  0xf9   : > { %v914_v8 = vpop.f32.mrf.mxu3 }
  0xfa   : > { %v934_v9 = vadd.f32 %v914_v8, %v867_v7  ;;  %v1810_v10 = vpop.f32.mrf.mxu1 }
  0xfb   : > { %v1137_v11 = vpack.c.bf16 %v1810_v10, %v1810_v10  ;;  %v1175_v7 = vmul.f32 %v1810_v10, %v1810_v10 }
  0xfc   : > { %v982_v15 = vpop.f32.mrf.mxu0  ;;  %v1000_v19 = vadd.f32 %v980_v4, %v934_v9  ;;  %v1152_v9 = vsel %vm1025_vm3, %v1801_v62, 0.0 }
  0xfd   : > { %1145 = vst.msk [vmem:[%s1799_s28 + $0x4] sm:$0xf] %vm1016_vm2, %v1137_v11  ;;  %v1153_v11 = vsel %vm1025_vm3, %v1810_v10, 0.0 }
  0xfe   : > { %v1008_v20 = vpack.c.bf16 %v1000_v19, %v1000_v19  ;;  %v1049_v28 = vmul.f32 %v1000_v19, %v1000_v19  ;;  %v1026_v30 = vsel %vm1025_vm3, %v1000_v19, 0.0 }
  0xff   : > { %v849_v14 = vpop.f32.mrf.mxu2 }
 0x100   : > { %1017 = vst.msk [vmem:[%s1817_s12] sm:$0xf] %vm1016_vm2, %v1008_v20  ;;  %v868_v16 = vadd.f32 %v849_v14, %v1782_v25  ;;  %v1057_v41 = vsel %vm1025_vm3, %v1049_v28, 0.0 }
 0x101   : > { %v916_v21 = vpop.f32.mrf.mxu3 }
 0x102   : > { %v935_v23 = vadd.f32 %v916_v21, %v868_v16  ;;  %v1121_v24 = vpop.f32.mrf.mxu1  ;;  %v1182_v21 = vsel %vm1025_vm3, %v1174_v6, 0.0 }
 0x103   : > { %v1138_v26 = vpack.c.bf16 %v1121_v24, %v1121_v24  ;;  %v1176_v19 = vmul.f32 %v1121_v24, %v1121_v24 }
 0x104   : > { %v985_v27 = vpop.f32.mrf.mxu0  ;;  %v1001_v29 = vadd.f32 %v982_v15, %v935_v23  ;;  %v1154_v23 = vadd.f32 %v1153_v11, %v1152_v9 }
 0x105   : > { %1146 = vst.msk [vmem:[%s1799_s28 + $0x8] sm:$0xf] %vm1016_vm2, %v1138_v26  ;;  %v1183_v26 = vsel %vm1025_vm3, %v1175_v7, 0.0 }
 0x106   : > { %v1009_v31 = vpack.c.bf16 %v1001_v29, %v1001_v29  ;;  %v1027_v34 = vsel %vm1025_vm3, %v1001_v29, 0.0  ;;  %v1050_v22 = vmul.f32 %v1001_v29, %v1001_v29 }
 0x107   : > { %v1028_v38 = vadd.f32 %v1027_v34, %v1026_v30  ;;  %v852_v25 = vpop.f32.mrf.mxu2 }
 0x108   : > { %1018 = vst.msk [vmem:[%s1817_s12 + $0x4] sm:$0xf] %vm1016_vm2, %v1009_v31  ;;  %v1058_v42 = vsel %vm1025_vm3, %v1050_v22, 0.0  ;;  %v869_v43 = vadd.f32 %v852_v25, %v1784_v40  ;;  %v1185_v25 = vsel %vm1025_vm3, %v1176_v19, 0.0 }
 0x109   : > { %v919_v44 = vpop.f32.mrf.mxu3  ;;  %v1059_v45 = vadd.f32 %v1058_v42, %v1057_v41 }
 0x10a   : > { %v936_v35 = vadd.f32 %v919_v44, %v869_v43  ;;  %v1123_v12 = vpop.f32.mrf.mxu1  ;;  %v1184_v44 = vadd.f32 %v1183_v26, %v1182_v21 }
 0x10b   : > { %v1139_v39 = vpack.c.bf16 %v1123_v12, %v1123_v12  ;;  %v1157_v10 = vsel %vm1025_vm3, %v1123_v12, 0.0  ;;  %v1177_v29 = vmul.f32 %v1123_v12, %v1123_v12 }
 0x10c   : > { %v987_v46 = vpop.f32.mrf.mxu0  ;;  %v1002_v18 = vadd.f32 %v985_v27, %v936_v35 }
 0x10d   : > { %1147 = vst.msk [vmem:[%s1799_s28 + $0xc] sm:$0xf] %vm1016_vm2, %v1139_v39  ;;  %v1187_v12 = vsel %vm1025_vm3, %v1177_v29, 0.0 }
 0x10e   : > { %v1010_v47 = vpack.c.bf16 %v1002_v18, %v1002_v18  ;;  %v1029_v13 = vsel %vm1025_vm3, %v1002_v18, 0.0  ;;  %v1051_v48 = vmul.f32 %v1002_v18, %v1002_v18 }
 0x10f   : > { %v1030_v49 = vadd.f32 %v1029_v13, %v1028_v38  ;;  %v854_v50 = vpop.f32.mrf.mxu2 }
 0x110   : > { %1019 = vst.msk [vmem:[%s1817_s12 + $0x8] sm:$0xf] %vm1016_vm2, %v1010_v47  ;;  %v1060_v40 = vsel %vm1025_vm3, %v1051_v48, 0.0  ;;  %v870_v51 = vadd.f32 %v854_v50, %v1786_v17 }
 0x111   : > { %v921_v52 = vpop.f32.mrf.mxu3  ;;  %v1061_v53 = vadd.f32 %v1060_v40, %v1059_v45 }
 0x112   : > { %v937_v55 = vadd.f32 %v921_v52, %v870_v51  ;;  %v1126_v57 = vpop.f32.mrf.mxu1 }
 0x113   : > { %v1140_v58 = vpack.c.bf16 %v1126_v57, %v1126_v57  ;;  %v1178_v22 = vmul.f32 %v1126_v57, %v1126_v57  ;;  %v1159_v41 = vsel %vm1025_vm3, %v1126_v57, 0.0 }
 0x114   : > { %v1003_v36 = vadd.f32 %v987_v46, %v937_v55  ;;  %v990_v59 = vpop.f32.mrf.mxu0 }
 0x115   : > { %1148 = vst.msk [vmem:[%s1799_s28 + $0x10] sm:$0xf] %vm1016_vm2, %v1140_v58  ;;  %v1189_v47 = vsel %vm1025_vm3, %v1178_v22, 0.0 }
 0x116   : > { %v1011_v60 = vpack.c.bf16 %v1003_v36, %v1003_v36  ;;  %v1031_v61 = vsel %vm1025_vm3, %v1003_v36, 0.0  ;;  %v1052_v63 = vmul.f32 %v1003_v36, %v1003_v36 }
 0x117   : > { %v1032_v0 = vadd.f32 %v1031_v61, %v1030_v49  ;;  %v857_v54 = vpop.f32.mrf.mxu2 }
 0x118   : > { %1020 = vst.msk [vmem:[%s1817_s12 + $0xc] sm:$0xf] %vm1016_vm2, %v1011_v60  ;;  %v1062_v17 = vsel %vm1025_vm3, %v1052_v63, 0.0  ;;  %v871_v1 = vadd.f32 %v857_v54, %v1789_v32  ;;  %v1155_v32 = vsel %vm1025_vm3, %v1121_v24, 0.0 }
 0x119   : > { %v924_v33 = vpop.f32.mrf.mxu3  ;;  %v1063_v3 = vadd.f32 %v1062_v17, %v1061_v53  ;;  %v1156_v34 = vadd.f32 %v1155_v32, %v1154_v23 }
 0x11a   : > { %v938_v4 = vadd.f32 %v924_v33, %v871_v1  ;;  %v1128_v5 = vpop.f32.mrf.mxu1 }
 0x11b   : > { %v1141_v8 = vpack.c.bf16 %v1128_v5, %v1128_v5  ;;  %v1158_v45 = vadd.f32 %v1157_v10, %v1156_v34  ;;  %v1179_v39 = vmul.f32 %v1128_v5, %v1128_v5  ;;  %v1161_v13 = vsel %vm1025_vm3, %v1128_v5, 0.0 }
 0x11c   : > { %v1004_v15 = vadd.f32 %v990_v59, %v938_v4  ;;  %v992_v27 = vpop.f32.mrf.mxu0 }
 0x11d   : > { %1149 = vst.msk [vmem:[%s1799_s28 + $0x14] sm:$0xf] %vm1016_vm2, %v1141_v8  ;;  %v1160_v18 = vadd.f32 %v1159_v41, %v1158_v45  ;;  %v1191_v58 = vsel %vm1025_vm3, %v1179_v39, 0.0 }
 0x11e   : > { %v1012_v20 = vpack.c.bf16 %v1004_v15, %v1004_v15  ;;  %v1033_v14 = vsel %vm1025_vm3, %v1004_v15, 0.0  ;;  %v1053_v16 = vmul.f32 %v1004_v15, %v1004_v15 }
 0x11f   : > { %v1034_v62 = vadd.f32 %v1033_v14, %v1032_v0  ;;  %v859_v28 = vpop.f32.mrf.mxu2  ;;  %v1162_v57 = vadd.f32 %v1161_v13, %v1160_v18 }
 0x120   : > { %1021 = vst.msk [vmem:[%s1817_s12 + $0x10] sm:$0xf] %vm1016_vm2, %v1012_v20  ;;  %v1064_v30 = vsel %vm1025_vm3, %v1053_v16, 0.0  ;;  %v872_v24 = vadd.f32 %v859_v28, %v1791_v56  ;;  %v1186_v56 = vadd.f32 %v1185_v25, %v1184_v44 }
 0x121   : > { %v926_v31 = vpop.f32.mrf.mxu3  ;;  %v1065_v38 = vadd.f32 %v1064_v30, %v1063_v3 }
 0x122   : > { %v939_v42 = vadd.f32 %v926_v31, %v872_v24  ;;  %v1131_v43 = vpop.f32.mrf.mxu1  ;;  %v1188_v51 = vadd.f32 %v1187_v12, %v1186_v56 }
 0x123   : > { %v1142_v35 = vpack.c.bf16 %v1131_v43, %v1131_v43  ;;  %v1180_v40 = vmul.f32 %v1131_v43, %v1131_v43  ;;  %v1163_v53 = vsel %vm1025_vm3, %v1131_v43, 0.0 }
 0x124   : > { %v1005_v46 = vadd.f32 %v992_v27, %v939_v42  ;;  %v1190_v61 = vadd.f32 %v1189_v47, %v1188_v51  ;;  %v995_v0 = vpop.f32.mrf.mxu0  ;;  %v1164_v54 = vadd.f32 %v1163_v53, %v1162_v57 }
 0x125   : > { %1150 = vst.msk [vmem:[%s1799_s28 + $0x18] sm:$0xf] %vm1016_vm2, %v1142_v35  ;;  %v1193_v17 = vsel %vm1025_vm3, %v1180_v40, 0.0 }
 0x126   : > { %v1013_v48 = vpack.c.bf16 %v1005_v46, %v1005_v46  ;;  %v1035_v49 = vsel %vm1025_vm3, %v1005_v46, 0.0  ;;  %v1054_v50 = vmul.f32 %v1005_v46, %v1005_v46  ;;  %v1192_v3 = vadd.f32 %v1191_v58, %v1190_v61 }
 0x127   : > { %v1036_v52 = vadd.f32 %v1035_v49, %v1034_v62  ;;  %v862_v55 = vpop.f32.mrf.mxu2 }
 0x128   : > { %1022 = vst.msk [vmem:[%s1817_s12 + $0x14] sm:$0xf] %vm1016_vm2, %v1013_v48  ;;  %v1066_v36 = vsel %vm1025_vm3, %v1054_v50, 0.0  ;;  %v873_v59 = vadd.f32 %v862_v55, %v1793_v37  ;;  %v1194_v9 = vadd.f32 %v1193_v17, %v1192_v3 }
 0x129   : > { %v929_v60 = vpop.f32.mrf.mxu3  ;;  %v1067_v63 = vadd.f32 %v1066_v36, %v1065_v38 }
 0x12a   : > { %v940_v1 = vadd.f32 %v929_v60, %v873_v59  ;;  %v1133_v33 = vpop.f32.mrf.mxu1 }
 0x12b   : > { %v1143_v4 = vpack.c.bf16 %v1133_v33, %v1133_v33  ;;  %v1165_v5 = vsel %vm1025_vm3, %v1133_v33, 0.0  ;;  %v1181_v6 = vmul.f32 %v1133_v33, %v1133_v33 }
 0x12c   : > { %v1006_v7 = vadd.f32 %v995_v0, %v940_v1  ;;  %v1166_v8 = vadd.f32 %v1165_v5, %v1164_v54  ;;  %v997_v24 = vpop.f32.mrf.mxu0 }
 0x12d   : > { %1151 = vst.msk [vmem:[%s1799_s28 + $0x1c] sm:$0xf] %vm1016_vm2, %v1143_v4  ;;  %v1195_v37 = vsel %vm1025_vm3, %v1181_v6, 0.0 }
 0x12e   : > { %v1014_v11 = vpack.c.bf16 %v1006_v7, %v1006_v7  ;;  %v1037_v15 = vsel %vm1025_vm3, %v1006_v7, 0.0  ;;  %v1055_v32 = vmul.f32 %v1006_v7, %v1006_v7  ;;  %v1167_v19 = vrot.slane %v1166_v8, 4 }
 0x12f   : > { %v1038_v20 = vadd.f32 %v1037_v15, %v1036_v52  ;;  %v1196_v14 = vadd.f32 %v1195_v37, %v1194_v9  ;;  %v864_v16 = vpop.f32.mrf.mxu2 }
 0x130   : > { %1023 = vst.msk [vmem:[%s1817_s12 + $0x18] sm:$0xf] %vm1016_vm2, %v1014_v11  ;;  %v1068_v21 = vsel %vm1025_vm3, %v1055_v32, 0.0  ;;  %v1168_v23 = vadd.f32 %v1167_v19, %v1166_v8  ;;  %v874_v26 = vadd.f32 %v864_v16, %v1807_v2 }
 0x131   : > { %v1069_v62 = vadd.f32 %v1068_v21, %v1067_v63  ;;  %v1197_v27 = vrot.slane %v1196_v14, 4  ;;  %v931_v28 = vpop.f32.mrf.mxu3 }
 0x132   : > { %v1169_v10 = vrot.slane %v1168_v23, 2  ;;  %v941_v29 = vadd.f32 %v931_v28, %v874_v26 }
 0x133   : > { %v1198_v30 = vadd.f32 %v1197_v27, %v1196_v14 }
 0x134   : > { %v1170_v31 = vadd.f32 %v1169_v10, %v1168_v23  ;;  %v1007_v34 = vadd.f32 %v997_v24, %v941_v29 }
 0x135   : > { %v1199_v22 = vrot.slane %v1198_v30, 2 }
 0x136   : > { %v1171_v38 = vrot.slane %v1170_v31, 1  ;;  %v1015_v25 = vpack.c.bf16 %v1007_v34, %v1007_v34  ;;  %v1039_v41 = vsel %vm1025_vm3, %v1007_v34, 0.0  ;;  %v1056_v42 = vmul.f32 %v1007_v34, %v1007_v34 }
 0x137   : > { %v1200_v2 = vadd.f32 %v1199_v22, %v1198_v30  ;;  %v1040_v43 = vadd.f32 %v1039_v41, %v1038_v20 }
 0x138   : > { %v1172_v44 = vadd.f32 %v1171_v38, %v1170_v31  ;;  %1024 = vst.msk [vmem:[%s1817_s12 + $0x1c] sm:$0xf] %vm1016_vm2, %v1015_v25  ;;  %v1070_v45 = vsel %vm1025_vm3, %v1056_v42, 0.0 }
 0x139   : > { %v1201_v35 = vrot.slane %v1200_v2, 1  ;;  %v1041_v12 = vrot.slane %v1040_v43, 4  ;;  %v1071_v39 = vadd.f32 %v1070_v45, %v1069_v62 }
 0x13a   : > { %1173 = vst.msk [vmem:[%s425_s16] sm:$0x1] %vm1047_vm4, %v1172_v44 }
 0x13b   : > { %v1202_v46 = vadd.f32 %v1201_v35, %v1200_v2  ;;  %v1042_v56 = vadd.f32 %v1041_v12, %v1040_v43  ;;  %v1072_v18 = vrot.slane %v1071_v39, 4 }
 0x13d   : > { %1203 = vst.msk [vmem:[%s425_s16 + $0x1] sm:$0x1] %vm1047_vm4, %v1202_v46  ;;  %v1043_v47 = vrot.slane %v1042_v56, 2  ;;  %v1073_v13 = vadd.f32 %v1072_v18, %v1071_v39 }
 0x13f   : > { %v1044_v48 = vadd.f32 %v1043_v47, %v1042_v56  ;;  %v1074_v49 = vrot.slane %v1073_v13, 2 }
 0x141   : > { %v1045_v50 = vrot.slane %v1044_v48, 1  ;;  %v1075_v40 = vadd.f32 %v1074_v49, %v1073_v13 }
 0x143   : > { %v1046_v51 = vadd.f32 %v1045_v50, %v1044_v48  ;;  %v1076_v52 = vrot.slane %v1075_v40, 1 }
 0x145   : > { %1048 = vst.msk [vmem:[%s416_s19] sm:$0x1] %vm1047_vm4, %v1046_v51  ;;  %v1077_v53 = vadd.f32 %v1076_v52, %v1075_v40 }
 0x147   : > { %1078 = vst.msk [vmem:[%s416_s19 + $0x1] sm:$0x1] %vm1047_vm4, %v1077_v53 }
 0x148 PF: > { %s20_s30 = sadd.s32 1, %s1498_s30  }
 0x149   : > { %p17_p4 = scmp.ge.s32.totalorder %s20_s30, 4  }
 0x14b   :  { %19 = sbr.rel (!%p17_p4) target bundleno = 1 (0x1), region = 129 }

</bundles_post_ra>
